<compile_context>
chip_gen: v7x
topology: tpu7x:2x2x1
jax: 0.10.0
libtpu: 0.0.40
codegen_flags: <defaults>
</compile_context>

<pallas_src>
import functools
import math

import jax
import jax.numpy as jnp
from jax.experimental import pallas as pl
from jax.experimental.pallas import tpu as pltpu


# ----------------------------------------------------------------------------
# Chip-generation-aware defaults (tile sizes + scoped-VMEM limit).
# ----------------------------------------------------------------------------
_DEFAULTS = None


def _defaults():
    global _DEFAULTS
    if _DEFAULTS is None:
        try:
            kind = jax.devices()[0].device_kind.lower()
        except Exception:
            kind = ""
        if "v7" in kind:       # v7x: 64 MiB VMEM, 256-wide MXU, 2 TCs
            _DEFAULTS = dict(tm=256, tn=256, tk=512, ts=256, vmem=48 * 2**20)
        elif "v6" in kind:     # v6e: 128 MiB VMEM, 256-wide MXU
            _DEFAULTS = dict(tm=512, tn=512, tk=512, ts=256, vmem=100 * 2**20)
        elif "v5" in kind:     # v5e/v5p: 128 MiB VMEM, 128-wide MXU
            _DEFAULTS = dict(tm=512, tn=512, tk=512, ts=128, vmem=100 * 2**20)
        else:
            _DEFAULTS = dict(tm=256, tn=256, tk=512, ts=128, vmem=None)
    return _DEFAULTS


def _compiler_params(sem):
    kw = dict(dimension_semantics=sem)
    v = _defaults()["vmem"]
    if v is not None:
        kw["vmem_limit_bytes"] = v
    return pltpu.CompilerParams(**kw)


def _round_up(x, m):
    return ((x + m - 1) // m) * m


def _choose_tile(dim, target):
    # Full-dim blocks are always legal; otherwise use the aligned target (and pad).
    return dim if dim <= target else target


def _pad_dim(x, axis, new_size):
    if x.shape[axis] == new_size:
        return x
    pads = [(0, 0)] * x.ndim
    pads[axis] = (0, new_size - x.shape[axis])
    return jnp.pad(x, pads)


# ----------------------------------------------------------------------------
# Kernel 1: tiled matmul  y = x @ w  (w stored (K, N); optional fused residual)
# ----------------------------------------------------------------------------
def _matmul_kernel(x_ref, w_ref, o_ref, acc_ref):
    @pl.when(pl.program_id(2) == 0)
    def _():
        acc_ref[...] = jnp.zeros_like(acc_ref)

    acc_ref[...] += jnp.dot(x_ref[...], w_ref[...],
                            preferred_element_type=jnp.float32)

    @pl.when(pl.program_id(2) == pl.num_programs(2) - 1)
    def _():
        o_ref[...] = acc_ref[...].astype(o_ref.dtype)


def _matmul_residual_kernel(x_ref, w_ref, r_ref, o_ref, acc_ref):
    @pl.when(pl.program_id(2) == 0)
    def _():
        acc_ref[...] = jnp.zeros_like(acc_ref)

    acc_ref[...] += jnp.dot(x_ref[...], w_ref[...],
                            preferred_element_type=jnp.float32)

    @pl.when(pl.program_id(2) == pl.num_programs(2) - 1)
    def _():
        o_ref[...] = (acc_ref[...]
                      + r_ref[...].astype(jnp.float32)).astype(o_ref.dtype)


def pallas_matmul(x, w, residual=None, *, tm=None, tn=None, tk=None):
    cfg = _defaults()
    tm = tm or cfg["tm"]
    tn = tn or cfg["tn"]
    tk = tk or cfg["tk"]
    M, K = x.shape
    K2, N = w.shape
    assert K == K2
    tm_, tn_, tk_ = _choose_tile(M, tm), _choose_tile(N, tn), _choose_tile(K, tk)
    Mp, Np, Kp = _round_up(M, tm_), _round_up(N, tn_), _round_up(K, tk_)
    xp = _pad_dim(_pad_dim(x, 0, Mp), 1, Kp)
    wp = _pad_dim(_pad_dim(w, 0, Kp), 1, Np)

    x_spec = pl.BlockSpec((tm_, tk_), lambda i, j, k: (i, k))
    w_spec = pl.BlockSpec((tk_, tn_), lambda i, j, k: (k, j))
    o_spec = pl.BlockSpec((tm_, tn_), lambda i, j, k: (i, j))
    common = dict(
        out_shape=jax.ShapeDtypeStruct((Mp, Np), x.dtype),
        grid=(Mp // tm_, Np // tn_, Kp // tk_),
        out_specs=o_spec,
        scratch_shapes=[pltpu.VMEM((tm_, tn_), jnp.float32)],
        compiler_params=_compiler_params(("parallel", "parallel", "arbitrary")),
    )
    if residual is None:
        out = pl.pallas_call(_matmul_kernel,
                             in_specs=[x_spec, w_spec], **common)(xp, wp)
    else:
        rp = _pad_dim(_pad_dim(residual, 0, Mp), 1, Np)
        r_spec = pl.BlockSpec((tm_, tn_), lambda i, j, k: (i, j))
        out = pl.pallas_call(_matmul_residual_kernel,
                             in_specs=[x_spec, w_spec, r_spec], **common)(xp, wp, rp)
    return out[:M, :N] if (Mp > M or Np > N) else out


# ----------------------------------------------------------------------------
# Kernel 2: fused gate/up projections + tanh-GELU(gate) * up epilogue
# ----------------------------------------------------------------------------
def _gate_up_kernel(x_ref, wg_ref, wu_ref, o_ref, accg_ref, accu_ref):
    @pl.when(pl.program_id(2) == 0)
    def _():
        accg_ref[...] = jnp.zeros_like(accg_ref)
        accu_ref[...] = jnp.zeros_like(accu_ref)

    x = x_ref[...]
    accg_ref[...] += jnp.dot(x, wg_ref[...], preferred_element_type=jnp.float32)
    accu_ref[...] += jnp.dot(x, wu_ref[...], preferred_element_type=jnp.float32)

    @pl.when(pl.program_id(2) == pl.num_programs(2) - 1)
    def _():
        g = accg_ref[...]
        c = math.sqrt(2.0 / math.pi)
        gelu = 0.5 * g * (1.0 + jnp.tanh(c * (g + 0.044715 * (g * g * g))))
        o_ref[...] = (gelu * accu_ref[...]).astype(o_ref.dtype)


def pallas_gate_up_geglu(x, w_gate, w_up, *, tm=None, tn=None, tk=None):
    cfg = _defaults()
    tm = tm or cfg["tm"]
    tn = tn or cfg["tn"]
    tk = tk or cfg["tk"]
    M, K = x.shape
    _, N = w_gate.shape
    tm_, tn_, tk_ = _choose_tile(M, tm), _choose_tile(N, tn), _choose_tile(K, tk)
    Mp, Np, Kp = _round_up(M, tm_), _round_up(N, tn_), _round_up(K, tk_)
    xp = _pad_dim(_pad_dim(x, 0, Mp), 1, Kp)
    wgp = _pad_dim(_pad_dim(w_gate, 0, Kp), 1, Np)
    wup = _pad_dim(_pad_dim(w_up, 0, Kp), 1, Np)
    out = pl.pallas_call(
        _gate_up_kernel,
        out_shape=jax.ShapeDtypeStruct((Mp, Np), x.dtype),
        grid=(Mp // tm_, Np // tn_, Kp // tk_),
        in_specs=[pl.BlockSpec((tm_, tk_), lambda i, j, k: (i, k)),
                  pl.BlockSpec((tk_, tn_), lambda i, j, k: (k, j)),
                  pl.BlockSpec((tk_, tn_), lambda i, j, k: (k, j))],
        out_specs=pl.BlockSpec((tm_, tn_), lambda i, j, k: (i, j)),
        scratch_shapes=[pltpu.VMEM((tm_, tn_), jnp.float32),
                        pltpu.VMEM((tm_, tn_), jnp.float32)],
        compiler_params=_compiler_params(("parallel", "parallel", "arbitrary")),
    )(xp, wgp, wup)
    return out[:M, :N] if (Mp > M or Np > N) else out


# ----------------------------------------------------------------------------
# Kernel 3: RMSNorm (Gemma: f32 math, scale by (1 + weight))
# ----------------------------------------------------------------------------
def _rmsnorm_kernel(x_ref, w_ref, o_ref, *, eps):
    x = x_ref[...].astype(jnp.float32)
    var = jnp.mean(x * x, axis=-1, keepdims=True)
    xn = x * jax.lax.rsqrt(var + eps)
    o_ref[...] = (xn * (1.0 + w_ref[...].astype(jnp.float32))).astype(o_ref.dtype)


def pallas_rmsnorm(x2d, w_row, eps, *, tm=512):
    M, H = x2d.shape
    tm_ = _choose_tile(M, tm)
    Mp = _round_up(M, tm_)
    xp = _pad_dim(x2d, 0, Mp)
    out = pl.pallas_call(
        functools.partial(_rmsnorm_kernel, eps=eps),
        out_shape=jax.ShapeDtypeStruct((Mp, H), x2d.dtype),
        grid=(Mp // tm_,),
        in_specs=[pl.BlockSpec((tm_, H), lambda i: (i, 0)),
                  pl.BlockSpec((1, H), lambda i: (0, 0))],
        out_specs=pl.BlockSpec((tm_, H), lambda i: (i, 0)),
        compiler_params=_compiler_params(("parallel",)),
    )(xp, w_row)
    return out[:M] if Mp > M else out


# ----------------------------------------------------------------------------
# Kernel 4: flash-style attention in (B, S, heads*D) layout.
#   - online softmax across the Sk grid axis (VMEM m/l/acc scratch per head)
#   - RoPE (identity rotate_half => x*(cos+sin)) + 1/sqrt(D) fused in
#   - causal mask via iota + causal block-skip (pl.when(ki <= qi))
#   - GQA: each K/V block DMA is reused by n_rep query heads
# ----------------------------------------------------------------------------
def _flash_kernel(q_ref, k_ref, v_ref, rotq_ref, rotk_ref, o_ref,
                  m_sc, l_sc, acc_sc, *, num_heads, num_kv_heads, head_dim,
                  scale, ts):
    qi = pl.program_id(1)
    ki = pl.program_id(2)
    H, KVH, D = num_heads, num_kv_heads, head_dim
    n_rep = H // KVH

    @pl.when(ki == 0)
    def _():
        m_sc[...] = jnp.full(m_sc.shape, -jnp.inf, dtype=jnp.float32)
        l_sc[...] = jnp.zeros(l_sc.shape, dtype=jnp.float32)
        acc_sc[...] = jnp.zeros(acc_sc.shape, dtype=jnp.float32)

    # Causal block-skip: KV blocks entirely in the future contribute nothing.
    @pl.when(ki <= qi)
    def _():
        rot_q = rotq_ref[0] * scale             # (ts, D) f32; 1/sqrt(D) folded in
        rot_k = rotk_ref[0]                     # (ts, D) f32
        qblk = q_ref[0].astype(jnp.float32)     # (ts, H*D)
        kblk = k_ref[0].astype(jnp.float32)     # (ts, KVH*D)
        vblk = v_ref[0]                         # (ts, KVH*D)

        # Causal mask generated in-kernel (no (B,1,S,S) HBM mask tensor).
        q_pos = qi * ts + jax.lax.broadcasted_iota(jnp.int32, (ts, ts), 0)
        k_pos = ki * ts + jax.lax.broadcasted_iota(jnp.int32, (ts, ts), 1)
        bias = jnp.where(q_pos >= k_pos, jnp.float32(0.0), jnp.float32(-1e30))

        for g in range(KVH):                    # one K/V block reused by n_rep heads
            k_h = kblk[:, g * D:(g + 1) * D] * rot_k
            v_h = vblk[:, g * D:(g + 1) * D]
            for r in range(n_rep):
                h = g * n_rep + r
                q_h = qblk[:, h * D:(h + 1) * D] * rot_q
                s = jax.lax.dot_general(q_h, k_h, (((1,), (1,)), ((), ())),
                                        preferred_element_type=jnp.float32)
                s = s + bias
                m_prev = m_sc[h]
                m_new = jnp.maximum(m_prev, jnp.max(s, axis=-1, keepdims=True))
                alpha = jnp.exp(m_prev - m_new)
                p = jnp.exp(s - m_new)
                l_sc[h] = alpha * l_sc[h] + jnp.sum(p, axis=-1, keepdims=True)
                acc_sc[h] = alpha * acc_sc[h] + jnp.dot(
                    p.astype(v_h.dtype), v_h, preferred_element_type=jnp.float32)
                m_sc[h] = m_new

    @pl.when(ki == pl.num_programs(2) - 1)
    def _():
        outs = [acc_sc[h] * pl.reciprocal(l_sc[h], approx=True) for h in range(H)]
        o_ref[0] = jnp.concatenate(outs, axis=-1).astype(o_ref.dtype)


def pallas_flash_attention(qkv, rot, num_heads, num_kv_heads, head_dim, *, ts=None):
    """qkv: (B, S, (H+2*KVH)*D) fused projection; rot: (B, S, D) f32 -> (B, S, H*D)."""
    cfg = _defaults()
    ts = ts or cfg["ts"]
    B, S, NT = qkv.shape
    H, KVH, D = num_heads, num_kv_heads, head_dim
    nq, nk = H * D, KVH * D
    n_rep = H // KVH
    assert NT == nq + 2 * nk

    ts_ = _choose_tile(S, ts)
    Sp = _round_up(S, ts_)
    qkv = _pad_dim(qkv, 1, Sp)
    rot = _pad_dim(rot, 1, Sp)

    kernel = functools.partial(_flash_kernel, num_heads=H, num_kv_heads=KVH,
                               head_dim=D, scale=1.0 / math.sqrt(D), ts=ts_)
    rotq_spec = pl.BlockSpec((1, ts_, D), lambda b, qi, ki: (b, qi, 0))
    rotk_spec = pl.BlockSpec((1, ts_, D), lambda b, qi, ki: (b, ki, 0))

    if nq % 128 == 0 and nk % 128 == 0:
        # Read q/k/v straight out of the fused qkv tensor via block-offset
        # index_maps (no HBM slice copies).
        in_specs = [pl.BlockSpec((1, ts_, nq), lambda b, qi, ki: (b, qi, 0)),
                    pl.BlockSpec((1, ts_, nk), lambda b, qi, ki: (b, ki, n_rep)),
                    pl.BlockSpec((1, ts_, nk), lambda b, qi, ki: (b, ki, n_rep + 1)),
                    rotq_spec, rotk_spec]
        args = (qkv, qkv, qkv, rot, rot)
    else:
        # Lane widths below 128: fall back to explicit q/k/v slices (full-dim blocks).
        q = qkv[..., :nq]
        k = qkv[..., nq:nq + nk]
        v = qkv[..., nq + nk:]
        in_specs = [pl.BlockSpec((1, ts_, nq), lambda b, qi, ki: (b, qi, 0)),
                    pl.BlockSpec((1, ts_, nk), lambda b, qi, ki: (b, ki, 0)),
                    pl.BlockSpec((1, ts_, nk), lambda b, qi, ki: (b, ki, 0)),
                    rotq_spec, rotk_spec]
        args = (q, k, v, rot, rot)

    out = pl.pallas_call(
        kernel,
        out_shape=jax.ShapeDtypeStruct((B, Sp, nq), qkv.dtype),
        grid=(B, Sp // ts_, Sp // ts_),
        in_specs=in_specs,
        out_specs=pl.BlockSpec((1, ts_, nq), lambda b, qi, ki: (b, qi, 0)),
        scratch_shapes=[pltpu.VMEM((H, ts_, 1), jnp.float32),
                        pltpu.VMEM((H, ts_, 1), jnp.float32),
                        pltpu.VMEM((H, ts_, D), jnp.float32)],
        compiler_params=_compiler_params(("parallel", "parallel", "arbitrary")),
    )(*args)
    return out[:, :S] if Sp > S else out


# ----------------------------------------------------------------------------
# Model glue (reshapes in plain JAX; all hot paths in Pallas)
# ----------------------------------------------------------------------------
@functools.partial(jax.jit, static_argnames=(
    "num_heads", "num_kv_heads", "head_dim", "hidden_size", "rope_theta", "rms_eps"))
def gemma_model_forward(params, inputs_embeds, position_ids, *,
                        num_heads, num_kv_heads, head_dim, hidden_size,
                        rope_theta, rms_eps):
    B, S, _ = inputs_embeds.shape
    dtype = inputs_embeds.dtype
    D = head_dim

    # GemmaModel: scale embeddings by sqrt(hidden_size).
    h2d = (inputs_embeds * jnp.asarray(math.sqrt(hidden_size), dtype)
           ).reshape(B * S, hidden_size)

    # Combined rotary table kept in float32 (no model-dtype round-trip).
    # rotate_half() in this module is cat(x1, x2) == identity, so RoPE = x*(cos+sin).
    inv_freq = 1.0 / (rope_theta ** (jnp.arange(0, D, 2, dtype=jnp.float32) / D))
    freqs = position_ids.astype(jnp.float32)[:, :, None] * inv_freq[None, None, :]
    emb = jnp.concatenate([freqs, freqs], axis=-1)            # (B, S, D)
    rot = jnp.cos(emb) + jnp.sin(emb)                         # float32

    for lp in params["layers"]:
        # --- self-attention sub-block (residual fused into o-proj epilogue) ---
        hn = pallas_rmsnorm(h2d, lp["input_ln_w"], rms_eps)
        qkv = pallas_matmul(hn, lp["w_qkv"])                  # fused Q/K/V projection
        o = pallas_flash_attention(qkv.reshape(B, S, qkv.shape[-1]), rot,
                                   num_heads, num_kv_heads, head_dim)
        h2d = pallas_matmul(o.reshape(B * S, num_heads * D), lp["w_o"],
                            residual=h2d)
        # --- MLP sub-block (residual fused into down-proj epilogue) ---
        hn = pallas_rmsnorm(h2d, lp["post_ln_w"], rms_eps)
        z = pallas_gate_up_geglu(hn, lp["w_gate"], lp["w_up"])
        h2d = pallas_matmul(z, lp["w_down"], residual=h2d)

    h2d = pallas_rmsnorm(h2d, params["final_ln_w"], rms_eps)
    return h2d.reshape(B, S, hidden_size)


def prepare_params(raw):
    """Pre-transpose / fuse weights once (torch Linear stores (out, in))."""
    layers = []
    for lp in raw["layers"]:
        layers.append({
            "w_qkv": jnp.concatenate([lp["q_w"].T, lp["k_w"].T, lp["v_w"].T], axis=1),
            "w_o": lp["o_w"].T,
            "w_gate": lp["gate_w"].T,
            "w_up": lp["up_w"].T,
            "w_down": lp["down_w"].T,
            "input_ln_w": lp["input_ln_w"].reshape(1, -1),
            "post_ln_w": lp["post_ln_w"].reshape(1, -1),
        })
    return {"layers": tuple(layers), "final_ln_w": raw["final_ln_w"].reshape(1, -1)}


# ----------------------------------------------------------------------------
# Pure-JAX reference (mirrors the PyTorch module, incl. identity rotate_half)
# ----------------------------------------------------------------------------
def _ref_rmsnorm(x, w, eps):
    xf = x.astype(jnp.float32)
    xn = xf * jax.lax.rsqrt(jnp.mean(xf * xf, axis=-1, keepdims=True) + eps)
    return (xn * (1.0 + w.astype(jnp.float32))).astype(x.dtype)


def _ref_attention(lp, hn, mask, cos, sin, num_heads, num_kv_heads, head_dim):
    B, S, _ = hn.shape
    q = (hn @ lp["q_w"].T).reshape(B, S, num_heads, head_dim).transpose(0, 2, 1, 3)
    k = (hn @ lp["k_w"].T).reshape(B, S, num_kv_heads, head_dim).transpose(0, 2, 1, 3)
    v = (hn @ lp["v_w"].T).reshape(B, S, num_kv_heads, head_dim).transpose(0, 2, 1, 3)
    cos_, sin_ = cos[:, None], sin[:, None]
    q = q * cos_ + q * sin_          # rotate_half() is the identity in this module
    k = k * cos_ + k * sin_
    n_rep = num_heads // num_kv_heads
    k = jnp.repeat(k, n_rep, axis=1)
    v = jnp.repeat(v, n_rep, axis=1)
    w = jnp.einsum("bhqd,bhkd->bhqk", q, k) / math.sqrt(head_dim)
    w = w + mask
    w = jax.nn.softmax(w.astype(jnp.float32), axis=-1).astype(q.dtype)
    o = jnp.einsum("bhqk,bhkd->bhqd", w, v)
    o = o.transpose(0, 2, 1, 3).reshape(B, S, num_heads * head_dim)
    return o @ lp["o_w"].T


def _ref_mlp(lp, x):
    y = jax.nn.gelu(x @ lp["gate_w"].T, approximate=True)
    return (y * (x @ lp["up_w"].T)) @ lp["down_w"].T


def reference_forward(raw, inputs_embeds, position_ids, *,
                      num_heads, num_kv_heads, head_dim, hidden_size,
                      rope_theta, rms_eps):
    dtype = inputs_embeds.dtype
    B, S, _ = inputs_embeds.shape
    h = inputs_embeds * jnp.asarray(math.sqrt(hidden_size), dtype)
    D = head_dim
    inv_freq = 1.0 / (rope_theta ** (jnp.arange(0, D, 2, dtype=jnp.float32) / D))
    freqs = position_ids.astype(jnp.float32)[:, :, None] * inv_freq[None, None, :]
    emb = jnp.concatenate([freqs, freqs], axis=-1)
    cos, sin = jnp.cos(emb).astype(dtype), jnp.sin(emb).astype(dtype)
    causal = jnp.tril(jnp.ones((S, S), dtype=bool))
    mask = jnp.where(causal, 0.0, -1e9).astype(dtype)[None, None]
    for lp in raw["layers"]:
        hn = _ref_rmsnorm(h, lp["input_ln_w"], rms_eps)
        h = h + _ref_attention(lp, hn, mask, cos, sin,
                               num_heads, num_kv_heads, head_dim)
        hn = _ref_rmsnorm(h, lp["post_ln_w"], rms_eps)
        h = h + _ref_mlp(lp, hn)
    return _ref_rmsnorm(h, raw["final_ln_w"], rms_eps)


# ----------------------------------------------------------------------------
# Test harness
# ----------------------------------------------------------------------------
def _build_raw(key, num_layers, hidden_size, num_heads, num_kv_heads, head_dim,
               intermediate_size, dtype):
    keys = jax.random.split(key, num_layers * 9 + 1)

    def _w(k_, shape, scale=0.05):
        return jax.random.normal(k_, shape, dtype) * scale

    layers, ki = [], 0
    for _ in range(num_layers):
        layers.append({
            "q_w": _w(keys[ki + 0], (num_heads * head_dim, hidden_size)),
            "k_w": _w(keys[ki + 1], (num_kv_heads * head_dim, hidden_size)),
            "v_w": _w(keys[ki + 2], (num_kv_heads * head_dim, hidden_size)),
            "o_w": _w(keys[ki + 3], (hidden_size, num_heads * head_dim)),
            "gate_w": _w(keys[ki + 4], (intermediate_size, hidden_size)),
            "up_w": _w(keys[ki + 5], (intermediate_size, hidden_size)),
            "down_w": _w(keys[ki + 6], (hidden_size, intermediate_size)),
            "input_ln_w": _w(keys[ki + 7], (hidden_size,), 0.1),
            "post_ln_w": _w(keys[ki + 8], (hidden_size,), 0.1),
        })
        ki += 9
    return {"layers": layers, "final_ln_w": _w(keys[ki], (hidden_size,), 0.1)}


def _run_case(name, *, B, S, hidden_size, num_heads, num_kv_heads, head_dim,
              intermediate_size, num_layers, rope_theta=10000.0, rms_eps=1e-6,
              dtype=jnp.float32):
    key = jax.random.PRNGKey(0)
    kp, ke = jax.random.split(key)
    raw = _build_raw(kp, num_layers, hidden_size, num_heads, num_kv_heads,
                     head_dim, intermediate_size, dtype)
    params = prepare_params(raw)
    inputs_embeds = jax.random.normal(ke, (B, S, hidden_size), dtype)
    position_ids = jnp.broadcast_to(jnp.arange(S, dtype=jnp.int32)[None, :], (B, S))

    out = gemma_model_forward(params, inputs_embeds, position_ids,
                              num_heads=num_heads, num_kv_heads=num_kv_heads,
                              head_dim=head_dim, hidden_size=hidden_size,
                              rope_theta=rope_theta, rms_eps=rms_eps)
    out = jax.block_until_ready(out)
    assert out.shape == (B, S, hidden_size)

    ref = reference_forward(raw, inputs_embeds, position_ids,
                            num_heads=num_heads, num_kv_heads=num_kv_heads,
                            head_dim=head_dim, hidden_size=hidden_size,
                            rope_theta=rope_theta, rms_eps=rms_eps)
    max_err = float(jnp.max(jnp.abs(out - ref)))
    assert jnp.allclose(out, ref, atol=3e-3, rtol=3e-3), \
        f"{name}: max abs err {max_err}"


if __name__ == "__main__":
    # Case 1: tiny GQA config (exercises the split-q/k/v fallback, head_dim < 128).
    _run_case("tiny", B=2, S=8, hidden_size=32, num_heads=4, num_kv_heads=2,
              head_dim=16, intermediate_size=128, num_layers=2)
    # Case 2: 128-aligned config (exercises the fused-qkv offset-BlockSpec path).
    _run_case("aligned", B=1, S=16, hidden_size=128, num_heads=2, num_kv_heads=1,
              head_dim=128, intermediate_size=256, num_layers=1)
    print("KERNEL_OK")
</pallas_src>

<mosaic_0001>
module attributes {stable_mosaic.version = 11 : i64} {
  func.func @_matmul_kernel(%arg0: i32, %arg1: i32, %arg2: i32, %arg3: memref<16x32xf32, #tpu.memory_space<vmem>>, %arg4: memref<32x128xf32, #tpu.memory_space<vmem>>, %arg5: memref<16x128xf32, #tpu.memory_space<vmem>>, %arg6: memref<16x128xf32, #tpu.memory_space<vmem>>) attributes {dimension_semantics = [#tpu.dimension_semantics<parallel>, #tpu.dimension_semantics<parallel>, #tpu.dimension_semantics<arbitrary>], iteration_bounds = array<i64: 1, 1, 1>, scalar_prefetch = 0 : i64, scratch_operands = 1 : i64, tpu.core_type = #tpu.core_type<tc>, window_params = [{transform_indices = @transform_0, window_bounds = array<i64: 16, 32>}, {transform_indices = @transform_1, window_bounds = array<i64: 32, 128>}, {transform_indices = @transform_2, window_bounds = array<i64: 16, 128>}]} {
    %c0_i32 = arith.constant 0 : i32
    %0 = arith.cmpi eq, %arg2, %c0_i32 : i32
    %1 = arith.extui %0 : i1 to i32
    %c0_i32_0 = arith.constant 0 : i32
    %2 = arith.cmpi ne, %1, %c0_i32_0 : i32
    scf.if %2 {
      %cst_10 = arith.constant 0.000000e+00 : f32
      %12 = vector.broadcast %cst_10 : f32 to vector<16x128xf32>
      %c0_11 = arith.constant 0 : index
      %c0_12 = arith.constant 0 : index
      %13 = vector.load %arg6[%c0_11, %c0_12] : memref<16x128xf32, #tpu.memory_space<vmem>>, vector<16x128xf32>
      tpu.vector_store %arg6[%c0_11, %c0_12], %12 {strides = array<i32>} : memref<16x128xf32, #tpu.memory_space<vmem>>, vector<16x128xf32>,
    } else {
    }
    %c0 = arith.constant 0 : index
    %c0_1 = arith.constant 0 : index
    %3 = vector.load %arg6[%c0, %c0_1] : memref<16x128xf32, #tpu.memory_space<vmem>>, vector<16x128xf32>
    %c0_2 = arith.constant 0 : index
    %c0_3 = arith.constant 0 : index
    %4 = vector.load %arg3[%c0_2, %c0_3] : memref<16x32xf32, #tpu.memory_space<vmem>>, vector<16x32xf32>
    %c0_4 = arith.constant 0 : index
    %c0_5 = arith.constant 0 : index
    %5 = vector.load %arg4[%c0_4, %c0_5] : memref<32x128xf32, #tpu.memory_space<vmem>>, vector<32x128xf32>
    %cst = arith.constant dense<0.000000e+00> : vector<16x128xf32>
    %6 = tpu.matmul %4, %5, %cst {dimension_numbers = #tpu.dot_dimension_numbers<[1], [0], [0], [1], [0, 0, 1, 1], [], []>} : vector<16x32xf32>, vector<32x128xf32>, vector<16x128xf32> -> vector<16x128xf32>
    %7 = arith.addf %3, %6 : vector<16x128xf32>
    %c0_6 = arith.constant 0 : index
    %c0_7 = arith.constant 0 : index
    %8 = vector.load %arg6[%c0_6, %c0_7] : memref<16x128xf32, #tpu.memory_space<vmem>>, vector<16x128xf32>
    tpu.vector_store %arg6[%c0_6, %c0_7], %7 {strides = array<i32>} : memref<16x128xf32, #tpu.memory_space<vmem>>, vector<16x128xf32>,
    %c0_i32_8 = arith.constant 0 : i32
    %9 = arith.cmpi eq, %arg2, %c0_i32_8 : i32
    %10 = arith.extui %9 : i1 to i32
    %c0_i32_9 = arith.constant 0 : i32
    %11 = arith.cmpi ne, %10, %c0_i32_9 : i32
    scf.if %11 {
      %c0_10 = arith.constant 0 : index
      %c0_11 = arith.constant 0 : index
      %12 = vector.load %arg6[%c0_10, %c0_11] : memref<16x128xf32, #tpu.memory_space<vmem>>, vector<16x128xf32>
      %c0_12 = arith.constant 0 : index
      %c0_13 = arith.constant 0 : index
      %13 = vector.load %arg5[%c0_12, %c0_13] : memref<16x128xf32, #tpu.memory_space<vmem>>, vector<16x128xf32>
      tpu.vector_store %arg5[%c0_12, %c0_13], %12 {strides = array<i32>} : memref<16x128xf32, #tpu.memory_space<vmem>>, vector<16x128xf32>,
    } else {
    }
    return
  }
  func.func @transform_0(%arg0: i32, %arg1: i32, %arg2: i32) -> (i32, i32) {
    %c0_i32 = arith.constant 0 : i32
    return %arg0, %arg2 : i32, i32
  }
  func.func @transform_1(%arg0: i32, %arg1: i32, %arg2: i32) -> (i32, i32) {
    %c0_i32 = arith.constant 0 : i32
    return %arg2, %arg1 : i32, i32
  }
  func.func @transform_2(%arg0: i32, %arg1: i32, %arg2: i32) -> (i32, i32) {
    %c0_i32 = arith.constant 0 : i32
    return %arg0, %arg1 : i32, i32
  }
}

module attributes {stable_mosaic.version = 11 : i64} {
  func.func @_rmsnorm_kernel(%arg0: i32, %arg1: memref<16x32xf32, #tpu.memory_space<vmem>>, %arg2: memref<1x32xf32, #tpu.memory_space<vmem>>, %arg3: memref<16x32xf32, #tpu.memory_space<vmem>>) attributes {dimension_semantics = [#tpu.dimension_semantics<parallel>], iteration_bounds = array<i64: 1>, scalar_prefetch = 0 : i64, scratch_operands = 0 : i64, tpu.core_type = #tpu.core_type<tc>, window_params = [{transform_indices = @transform_0, window_bounds = array<i64: 16, 32>}, {pipeline_mode = #tpu.pipeline_mode<synchronous>, transform_indices = @transform_1, window_bounds = array<i64: 1, 32>}, {transform_indices = @transform_2, window_bounds = array<i64: 16, 32>}]} {
    %c0 = arith.constant 0 : index
    %c0_0 = arith.constant 0 : index
    %0 = vector.load %arg1[%c0, %c0_0] : memref<16x32xf32, #tpu.memory_space<vmem>>, vector<16x32xf32>
    %1 = arith.mulf %0, %0 : vector<16x32xf32>
    %cst = arith.constant dense<0.000000e+00> : vector<16xf32>
    %2 = vector.multi_reduction <add>, %1, %cst [1] : vector<16x32xf32> to vector<16xf32>
    %3 = vector.shape_cast %2 : vector<16xf32> to vector<16x1xf32>
    %cst_1 = arith.constant 3.200000e+01 : f32
    %4 = vector.broadcast %cst_1 : f32 to vector<16x1xf32>
    %5 = arith.divf %3, %4 : vector<16x1xf32>
    %cst_2 = arith.constant 9.99999997E-7 : f32
    %6 = vector.broadcast %cst_2 : f32 to vector<16x1xf32>
    %7 = arith.addf %5, %6 : vector<16x1xf32>
    %8 = math.rsqrt %7 : vector<16x1xf32>
    %9 = vector.broadcast %8 : vector<16x1xf32> to vector<16x32xf32>
    %10 = arith.mulf %0, %9 : vector<16x32xf32>
    %c0_3 = arith.constant 0 : index
    %c0_4 = arith.constant 0 : index
    %11 = vector.load %arg2[%c0_3, %c0_4] : memref<1x32xf32, #tpu.memory_space<vmem>>, vector<1x32xf32>
    %cst_5 = arith.constant 1.000000e+00 : f32
    %12 = vector.broadcast %cst_5 : f32 to vector<1x32xf32>
    %13 = arith.addf %12, %11 : vector<1x32xf32>
    %14 = vector.broadcast %13 : vector<1x32xf32> to vector<16x32xf32>
    %15 = arith.mulf %10, %14 : vector<16x32xf32>
    %c0_6 = arith.constant 0 : index
    %c0_7 = arith.constant 0 : index
    %16 = vector.load %arg3[%c0_6, %c0_7] : memref<16x32xf32, #tpu.memory_space<vmem>>, vector<16x32xf32>
    tpu.vector_store %arg3[%c0_6, %c0_7], %15 {strides = array<i32>} : memref<16x32xf32, #tpu.memory_space<vmem>>, vector<16x32xf32>,
    return
  }
  func.func @transform_0(%arg0: i32) -> (i32, i32) {
    %c0_i32 = arith.constant 0 : i32
    %c0_i32_0 = arith.constant 0 : i32
    return %arg0, %c0_i32 : i32, i32
  }
  func.func @transform_1(%arg0: i32) -> (i32, i32) {
    %c0_i32 = arith.constant 0 : i32
    %c0_i32_0 = arith.constant 0 : i32
    %c0_i32_1 = arith.constant 0 : i32
    return %c0_i32, %c0_i32_0 : i32, i32
  }
  func.func @transform_2(%arg0: i32) -> (i32, i32) {
    %c0_i32 = arith.constant 0 : i32
    %c0_i32_0 = arith.constant 0 : i32
    return %arg0, %c0_i32 : i32, i32
  }
}

module attributes {stable_mosaic.version = 11 : i64} {
  func.func @_flash_kernel(%arg0: i32, %arg1: i32, %arg2: i32, %arg3: memref<1x8x64xf32, #tpu.memory_space<vmem>>, %arg4: memref<1x8x32xf32, #tpu.memory_space<vmem>>, %arg5: memref<1x8x32xf32, #tpu.memory_space<vmem>>, %arg6: memref<1x8x16xf32, #tpu.memory_space<vmem>>, %arg7: memref<1x8x16xf32, #tpu.memory_space<vmem>>, %arg8: memref<1x8x64xf32, #tpu.memory_space<vmem>>, %arg9: memref<4x8x1xf32, #tpu.memory_space<vmem>>, %arg10: memref<4x8x1xf32, #tpu.memory_space<vmem>>, %arg11: memref<4x8x16xf32, #tpu.memory_space<vmem>>) attributes {dimension_semantics = [#tpu.dimension_semantics<parallel>, #tpu.dimension_semantics<parallel>, #tpu.dimension_semantics<arbitrary>], iteration_bounds = array<i64: 2, 1, 1>, scalar_prefetch = 0 : i64, scratch_operands = 3 : i64, tpu.core_type = #tpu.core_type<tc>, window_params = [{transform_indices = @transform_0, window_bounds = array<i64: 1, 8, 64>}, {transform_indices = @transform_1, window_bounds = array<i64: 1, 8, 32>}, {transform_indices = @transform_2, window_bounds = array<i64: 1, 8, 32>}, {transform_indices = @transform_3, window_bounds = array<i64: 1, 8, 16>}, {transform_indices = @transform_4, window_bounds = array<i64: 1, 8, 16>}, {transform_indices = @transform_5, window_bounds = array<i64: 1, 8, 64>}]} {
    %c0_i32 = arith.constant 0 : i32
    %0 = arith.cmpi eq, %arg2, %c0_i32 : i32
    %1 = arith.extui %0 : i1 to i32
    %c0_i32_0 = arith.constant 0 : i32
    %2 = arith.cmpi ne, %1, %c0_i32_0 : i32
    scf.if %2 {
      %cst = arith.constant 0xFF800000 : f32
      %9 = vector.broadcast %cst : f32 to vector<4x8x1xf32>
      %c0 = arith.constant 0 : index
      %c0_4 = arith.constant 0 : index
      %c0_5 = arith.constant 0 : index
      %10 = vector.load %arg9[%c0, %c0_4, %c0_5] : memref<4x8x1xf32, #tpu.memory_space<vmem>>, vector<4x8x1xf32>
      tpu.vector_store %arg9[%c0, %c0_4, %c0_5], %9 {strides = array<i32>} : memref<4x8x1xf32, #tpu.memory_space<vmem>>, vector<4x8x1xf32>,
      %cst_6 = arith.constant 0.000000e+00 : f32
      %11 = vector.broadcast %cst_6 : f32 to vector<4x8x1xf32>
      %c0_7 = arith.constant 0 : index
      %c0_8 = arith.constant 0 : index
      %c0_9 = arith.constant 0 : index
      %12 = vector.load %arg10[%c0_7, %c0_8, %c0_9] : memref<4x8x1xf32, #tpu.memory_space<vmem>>, vector<4x8x1xf32>
      tpu.vector_store %arg10[%c0_7, %c0_8, %c0_9], %11 {strides = array<i32>} : memref<4x8x1xf32, #tpu.memory_space<vmem>>, vector<4x8x1xf32>,
      %cst_10 = arith.constant 0.000000e+00 : f32
      %13 = vector.broadcast %cst_10 : f32 to vector<4x8x16xf32>
      %c0_11 = arith.constant 0 : index
      %c0_12 = arith.constant 0 : index
      %c0_13 = arith.constant 0 : index
      %14 = vector.load %arg11[%c0_11, %c0_12, %c0_13] : memref<4x8x16xf32, #tpu.memory_space<vmem>>, vector<4x8x16xf32>
      tpu.vector_store %arg11[%c0_11, %c0_12, %c0_13], %13 {strides = array<i32>} : memref<4x8x16xf32, #tpu.memory_space<vmem>>, vector<4x8x16xf32>,
    } else {
    }
    %3 = arith.cmpi sle, %arg2, %arg1 : i32
    %4 = arith.extui %3 : i1 to i32
    %c0_i32_1 = arith.constant 0 : i32
    %5 = arith.cmpi ne, %4, %c0_i32_1 : i32
    scf.if %5 {
      %c0 = arith.constant 0 : index
      %c0_4 = arith.constant 0 : index
      %c0_5 = arith.constant 0 : index
      %9 = vector.load %arg6[%c0, %c0_4, %c0_5] : memref<1x8x16xf32, #tpu.memory_space<vmem>>, vector<1x8x16xf32>
      %10 = vector.shape_cast %9 : vector<1x8x16xf32> to vector<8x16xf32>
      %cst = arith.constant 2.500000e-01 : f32
      %11 = vector.broadcast %cst : f32 to vector<8x16xf32>
      %12 = arith.mulf %10, %11 : vector<8x16xf32>
      %c0_6 = arith.constant 0 : index
      %c0_7 = arith.constant 0 : index
      %c0_8 = arith.constant 0 : index
      %13 = vector.load %arg7[%c0_6, %c0_7, %c0_8] : memref<1x8x16xf32, #tpu.memory_space<vmem>>, vector<1x8x16xf32>
      %14 = vector.shape_cast %13 : vector<1x8x16xf32> to vector<8x16xf32>
      %c0_9 = arith.constant 0 : index
      %c0_10 = arith.constant 0 : index
      %c0_11 = arith.constant 0 : index
      %15 = vector.load %arg3[%c0_9, %c0_10, %c0_11] : memref<1x8x64xf32, #tpu.memory_space<vmem>>, vector<1x8x64xf32>
      %16 = vector.shape_cast %15 : vector<1x8x64xf32> to vector<8x64xf32>
      %c0_12 = arith.constant 0 : index
      %c0_13 = arith.constant 0 : index
      %c0_14 = arith.constant 0 : index
      %17 = vector.load %arg4[%c0_12, %c0_13, %c0_14] : memref<1x8x32xf32, #tpu.memory_space<vmem>>, vector<1x8x32xf32>
      %18 = vector.shape_cast %17 : vector<1x8x32xf32> to vector<8x32xf32>
      %c0_15 = arith.constant 0 : index
      %c0_16 = arith.constant 0 : index
      %c0_17 = arith.constant 0 : index
      %19 = vector.load %arg5[%c0_15, %c0_16, %c0_17] : memref<1x8x32xf32, #tpu.memory_space<vmem>>, vector<1x8x32xf32>
      %20 = vector.shape_cast %19 : vector<1x8x32xf32> to vector<8x32xf32>
      %c8_i32 = arith.constant 8 : i32
      %21 = arith.muli %arg1, %c8_i32 : i32
      %22 = tpu.iota {dimensions = array<i32: 0>} : vector<8x8xi32>
      %23 = vector.broadcast %21 : i32 to vector<8x8xi32>
      %24 = arith.addi %23, %22 : vector<8x8xi32>
      %c8_i32_18 = arith.constant 8 : i32
      %25 = arith.muli %arg2, %c8_i32_18 : i32
      %26 = tpu.iota {dimensions = array<i32: 1>} : vector<8x8xi32>
      %27 = vector.broadcast %25 : i32 to vector<8x8xi32>
      %28 = arith.addi %27, %26 : vector<8x8xi32>
      %29 = arith.cmpi sge, %24, %28 : vector<8x8xi32>
      %cst_19 = arith.constant 0.000000e+00 : f32
      %cst_20 = arith.constant -1.000000e+30 : f32
      %30 = vector.broadcast %cst_19 : f32 to vector<8x8xf32>
      %31 = vector.broadcast %cst_20 : f32 to vector<8x8xf32>
      %32 = arith.select %29, %30, %31 : vector<8x8xi1>, vector<8x8xf32>
      %33 = vector.extract_strided_slice %18 {offsets = [0, 0], sizes = [8, 16], strides = [1, 1]} : vector<8x32xf32> to vector<8x16xf32>
      %34 = arith.mulf %33, %14 : vector<8x16xf32>
      %35 = vector.extract_strided_slice %20 {offsets = [0, 0], sizes = [8, 16], strides = [1, 1]} : vector<8x32xf32> to vector<8x16xf32>
      %36 = vector.extract_strided_slice %16 {offsets = [0, 0], sizes = [8, 16], strides = [1, 1]} : vector<8x64xf32> to vector<8x16xf32>
      %37 = arith.mulf %36, %12 : vector<8x16xf32>
      %cst_21 = arith.constant dense<0.000000e+00> : vector<8x8xf32>
      %38 = tpu.matmul %37, %34, %cst_21 {dimension_numbers = #tpu.dot_dimension_numbers<[1], [1], [0], [0], [0, 0, 1, 0], [], []>} : vector<8x16xf32>, vector<8x16xf32>, vector<8x8xf32> -> vector<8x8xf32>
      %39 = arith.addf %38, %32 : vector<8x8xf32>
      %c0_22 = arith.constant 0 : index
      %c0_23 = arith.constant 0 : index
      %c0_24 = arith.constant 0 : index
      %40 = vector.load %arg9[%c0_22, %c0_23, %c0_24] : memref<4x8x1xf32, #tpu.memory_space<vmem>>, vector<1x8x1xf32>
      %41 = vector.shape_cast %40 : vector<1x8x1xf32> to vector<8x1xf32>
      %cst_25 = arith.constant dense<0xFF800000> : vector<8xf32>
      %42 = vector.multi_reduction <maximumf>, %39, %cst_25 [1] : vector<8x8xf32> to vector<8xf32>
      %43 = vector.shape_cast %42 : vector<8xf32> to vector<8x1xf32>
      %44 = arith.maximumf %41, %43 : vector<8x1xf32>
      %45 = arith.subf %41, %44 : vector<8x1xf32>
      %46 = math.exp %45 : vector<8x1xf32>
      %47 = vector.broadcast %44 : vector<8x1xf32> to vector<8x8xf32>
      %48 = arith.subf %39, %47 : vector<8x8xf32>
      %49 = math.exp %48 : vector<8x8xf32>
      %c0_26 = arith.constant 0 : index
      %c0_27 = arith.constant 0 : index
      %c0_28 = arith.constant 0 : index
      %50 = vector.load %arg10[%c0_26, %c0_27, %c0_28] : memref<4x8x1xf32, #tpu.memory_space<vmem>>, vector<1x8x1xf32>
      %51 = vector.shape_cast %50 : vector<1x8x1xf32> to vector<8x1xf32>
      %52 = arith.mulf %46, %51 : vector<8x1xf32>
      %cst_29 = arith.constant dense<0.000000e+00> : vector<8xf32>
      %53 = vector.multi_reduction <add>, %49, %cst_29 [1] : vector<8x8xf32> to vector<8xf32>
      %54 = vector.shape_cast %53 : vector<8xf32> to vector<8x1xf32>
      %55 = arith.addf %52, %54 : vector<8x1xf32>
      %c0_30 = arith.constant 0 : index
      %c0_31 = arith.constant 0 : index
      %c0_32 = arith.constant 0 : index
      %56 = vector.load %arg10[%c0_30, %c0_31, %c0_32] : memref<4x8x1xf32, #tpu.memory_space<vmem>>, vector<1x8x1xf32>
      %57 = vector.shape_cast %56 : vector<1x8x1xf32> to vector<8x1xf32>
      %58 = vector.shape_cast %55 : vector<8x1xf32> to vector<1x8x1xf32>
      tpu.vector_store %arg10[%c0_30, %c0_31, %c0_32], %58 {strides = array<i32>} : memref<4x8x1xf32, #tpu.memory_space<vmem>>, vector<1x8x1xf32>,
      %c0_33 = arith.constant 0 : index
      %c0_34 = arith.constant 0 : index
      %c0_35 = arith.constant 0 : index
      %59 = vector.load %arg11[%c0_33, %c0_34, %c0_35] : memref<4x8x16xf32, #tpu.memory_space<vmem>>, vector<1x8x16xf32>
      %60 = vector.shape_cast %59 : vector<1x8x16xf32> to vector<8x16xf32>
      %61 = vector.broadcast %46 : vector<8x1xf32> to vector<8x16xf32>
      %62 = arith.mulf %61, %60 : vector<8x16xf32>
      %cst_36 = arith.constant dense<0.000000e+00> : vector<8x16xf32>
      %63 = tpu.matmul %49, %35, %cst_36 {dimension_numbers = #tpu.dot_dimension_numbers<[1], [0], [0], [1], [0, 0, 1, 1], [], []>} : vector<8x8xf32>, vector<8x16xf32>, vector<8x16xf32> -> vector<8x16xf32>
      %64 = arith.addf %62, %63 : vector<8x16xf32>
      %c0_37 = arith.constant 0 : index
      %c0_38 = arith.constant 0 : index
      %c0_39 = arith.constant 0 : index
      %65 = vector.load %arg11[%c0_37, %c0_38, %c0_39] : memref<4x8x16xf32, #tpu.memory_space<vmem>>, vector<1x8x16xf32>
      %66 = vector.shape_cast %65 : vector<1x8x16xf32> to vector<8x16xf32>
      %67 = vector.shape_cast %64 : vector<8x16xf32> to vector<1x8x16xf32>
      tpu.vector_store %arg11[%c0_37, %c0_38, %c0_39], %67 {strides = array<i32>} : memref<4x8x16xf32, #tpu.memory_space<vmem>>, vector<1x8x16xf32>,
      %c0_40 = arith.constant 0 : index
      %c0_41 = arith.constant 0 : index
      %c0_42 = arith.constant 0 : index
      %68 = vector.load %arg9[%c0_40, %c0_41, %c0_42] : memref<4x8x1xf32, #tpu.memory_space<vmem>>, vector<1x8x1xf32>
      %69 = vector.shape_cast %68 : vector<1x8x1xf32> to vector<8x1xf32>
      %70 = vector.shape_cast %44 : vector<8x1xf32> to vector<1x8x1xf32>
      tpu.vector_store %arg9[%c0_40, %c0_41, %c0_42], %70 {strides = array<i32>} : memref<4x8x1xf32, #tpu.memory_space<vmem>>, vector<1x8x1xf32>,
      %71 = vector.extract_strided_slice %16 {offsets = [0, 16], sizes = [8, 16], strides = [1, 1]} : vector<8x64xf32> to vector<8x16xf32>
      %72 = arith.mulf %71, %12 : vector<8x16xf32>
      %cst_43 = arith.constant dense<0.000000e+00> : vector<8x8xf32>
      %73 = tpu.matmul %72, %34, %cst_43 {dimension_numbers = #tpu.dot_dimension_numbers<[1], [1], [0], [0], [0, 0, 1, 0], [], []>} : vector<8x16xf32>, vector<8x16xf32>, vector<8x8xf32> -> vector<8x8xf32>
      %74 = arith.addf %73, %32 : vector<8x8xf32>
      %c1 = arith.constant 1 : index
      %c0_44 = arith.constant 0 : index
      %c0_45 = arith.constant 0 : index
      %75 = vector.load %arg9[%c1, %c0_44, %c0_45] : memref<4x8x1xf32, #tpu.memory_space<vmem>>, vector<1x8x1xf32>
      %76 = vector.shape_cast %75 : vector<1x8x1xf32> to vector<8x1xf32>
      %cst_46 = arith.constant dense<0xFF800000> : vector<8xf32>
      %77 = vector.multi_reduction <maximumf>, %74, %cst_46 [1] : vector<8x8xf32> to vector<8xf32>
      %78 = vector.shape_cast %77 : vector<8xf32> to vector<8x1xf32>
      %79 = arith.maximumf %76, %78 : vector<8x1xf32>
      %80 = arith.subf %76, %79 : vector<8x1xf32>
      %81 = math.exp %80 : vector<8x1xf32>
      %82 = vector.broadcast %79 : vector<8x1xf32> to vector<8x8xf32>
      %83 = arith.subf %74, %82 : vector<8x8xf32>
      %84 = math.exp %83 : vector<8x8xf32>
      %c1_47 = arith.constant 1 : index
      %c0_48 = arith.constant 0 : index
      %c0_49 = arith.constant 0 : index
      %85 = vector.load %arg10[%c1_47, %c0_48, %c0_49] : memref<4x8x1xf32, #tpu.memory_space<vmem>>, vector<1x8x1xf32>
      %86 = vector.shape_cast %85 : vector<1x8x1xf32> to vector<8x1xf32>
      %87 = arith.mulf %81, %86 : vector<8x1xf32>
      %cst_50 = arith.constant dense<0.000000e+00> : vector<8xf32>
      %88 = vector.multi_reduction <add>, %84, %cst_50 [1] : vector<8x8xf32> to vector<8xf32>
      %89 = vector.shape_cast %88 : vector<8xf32> to vector<8x1xf32>
      %90 = arith.addf %87, %89 : vector<8x1xf32>
      %c1_51 = arith.constant 1 : index
      %c0_52 = arith.constant 0 : index
      %c0_53 = arith.constant 0 : index
      %91 = vector.load %arg10[%c1_51, %c0_52, %c0_53] : memref<4x8x1xf32, #tpu.memory_space<vmem>>, vector<1x8x1xf32>
      %92 = vector.shape_cast %91 : vector<1x8x1xf32> to vector<8x1xf32>
      %93 = vector.shape_cast %90 : vector<8x1xf32> to vector<1x8x1xf32>
      tpu.vector_store %arg10[%c1_51, %c0_52, %c0_53], %93 {strides = array<i32>} : memref<4x8x1xf32, #tpu.memory_space<vmem>>, vector<1x8x1xf32>,
      %c1_54 = arith.constant 1 : index
      %c0_55 = arith.constant 0 : index
      %c0_56 = arith.constant 0 : index
      %94 = vector.load %arg11[%c1_54, %c0_55, %c0_56] : memref<4x8x16xf32, #tpu.memory_space<vmem>>, vector<1x8x16xf32>
      %95 = vector.shape_cast %94 : vector<1x8x16xf32> to vector<8x16xf32>
      %96 = vector.broadcast %81 : vector<8x1xf32> to vector<8x16xf32>
      %97 = arith.mulf %96, %95 : vector<8x16xf32>
      %cst_57 = arith.constant dense<0.000000e+00> : vector<8x16xf32>
      %98 = tpu.matmul %84, %35, %cst_57 {dimension_numbers = #tpu.dot_dimension_numbers<[1], [0], [0], [1], [0, 0, 1, 1], [], []>} : vector<8x8xf32>, vector<8x16xf32>, vector<8x16xf32> -> vector<8x16xf32>
      %99 = arith.addf %97, %98 : vector<8x16xf32>
      %c1_58 = arith.constant 1 : index
      %c0_59 = arith.constant 0 : index
      %c0_60 = arith.constant 0 : index
      %100 = vector.load %arg11[%c1_58, %c0_59, %c0_60] : memref<4x8x16xf32, #tpu.memory_space<vmem>>, vector<1x8x16xf32>
      %101 = vector.shape_cast %100 : vector<1x8x16xf32> to vector<8x16xf32>
      %102 = vector.shape_cast %99 : vector<8x16xf32> to vector<1x8x16xf32>
      tpu.vector_store %arg11[%c1_58, %c0_59, %c0_60], %102 {strides = array<i32>} : memref<4x8x16xf32, #tpu.memory_space<vmem>>, vector<1x8x16xf32>,
      %c1_61 = arith.constant 1 : index
      %c0_62 = arith.constant 0 : index
      %c0_63 = arith.constant 0 : index
      %103 = vector.load %arg9[%c1_61, %c0_62, %c0_63] : memref<4x8x1xf32, #tpu.memory_space<vmem>>, vector<1x8x1xf32>
      %104 = vector.shape_cast %103 : vector<1x8x1xf32> to vector<8x1xf32>
      %105 = vector.shape_cast %79 : vector<8x1xf32> to vector<1x8x1xf32>
      tpu.vector_store %arg9[%c1_61, %c0_62, %c0_63], %105 {strides = array<i32>} : memref<4x8x1xf32, #tpu.memory_space<vmem>>, vector<1x8x1xf32>,
      %106 = vector.extract_strided_slice %18 {offsets = [0, 16], sizes = [8, 16], strides = [1, 1]} : vector<8x32xf32> to vector<8x16xf32>
      %107 = arith.mulf %106, %14 : vector<8x16xf32>
      %108 = vector.extract_strided_slice %20 {offsets = [0, 16], sizes = [8, 16], strides = [1, 1]} : vector<8x32xf32> to vector<8x16xf32>
      %109 = vector.extract_strided_slice %16 {offsets = [0, 32], sizes = [8, 16], strides = [1, 1]} : vector<8x64xf32> to vector<8x16xf32>
      %110 = arith.mulf %109, %12 : vector<8x16xf32>
      %cst_64 = arith.constant dense<0.000000e+00> : vector<8x8xf32>
      %111 = tpu.matmul %110, %107, %cst_64 {dimension_numbers = #tpu.dot_dimension_numbers<[1], [1], [0], [0], [0, 0, 1, 0], [], []>} : vector<8x16xf32>, vector<8x16xf32>, vector<8x8xf32> -> vector<8x8xf32>
      %112 = arith.addf %111, %32 : vector<8x8xf32>
      %c2 = arith.constant 2 : index
      %c0_65 = arith.constant 0 : index
      %c0_66 = arith.constant 0 : index
      %113 = vector.load %arg9[%c2, %c0_65, %c0_66] : memref<4x8x1xf32, #tpu.memory_space<vmem>>, vector<1x8x1xf32>
      %114 = vector.shape_cast %113 : vector<1x8x1xf32> to vector<8x1xf32>
      %cst_67 = arith.constant dense<0xFF800000> : vector<8xf32>
      %115 = vector.multi_reduction <maximumf>, %112, %cst_67 [1] : vector<8x8xf32> to vector<8xf32>
      %116 = vector.shape_cast %115 : vector<8xf32> to vector<8x1xf32>
      %117 = arith.maximumf %114, %116 : vector<8x1xf32>
      %118 = arith.subf %114, %117 : vector<8x1xf32>
      %119 = math.exp %118 : vector<8x1xf32>
      %120 = vector.broadcast %117 : vector<8x1xf32> to vector<8x8xf32>
      %121 = arith.subf %112, %120 : vector<8x8xf32>
      %122 = math.exp %121 : vector<8x8xf32>
      %c2_68 = arith.constant 2 : index
      %c0_69 = arith.constant 0 : index
      %c0_70 = arith.constant 0 : index
      %123 = vector.load %arg10[%c2_68, %c0_69, %c0_70] : memref<4x8x1xf32, #tpu.memory_space<vmem>>, vector<1x8x1xf32>
      %124 = vector.shape_cast %123 : vector<1x8x1xf32> to vector<8x1xf32>
      %125 = arith.mulf %119, %124 : vector<8x1xf32>
      %cst_71 = arith.constant dense<0.000000e+00> : vector<8xf32>
      %126 = vector.multi_reduction <add>, %122, %cst_71 [1] : vector<8x8xf32> to vector<8xf32>
      %127 = vector.shape_cast %126 : vector<8xf32> to vector<8x1xf32>
      %128 = arith.addf %125, %127 : vector<8x1xf32>
      %c2_72 = arith.constant 2 : index
      %c0_73 = arith.constant 0 : index
      %c0_74 = arith.constant 0 : index
      %129 = vector.load %arg10[%c2_72, %c0_73, %c0_74] : memref<4x8x1xf32, #tpu.memory_space<vmem>>, vector<1x8x1xf32>
      %130 = vector.shape_cast %129 : vector<1x8x1xf32> to vector<8x1xf32>
      %131 = vector.shape_cast %128 : vector<8x1xf32> to vector<1x8x1xf32>
      tpu.vector_store %arg10[%c2_72, %c0_73, %c0_74], %131 {strides = array<i32>} : memref<4x8x1xf32, #tpu.memory_space<vmem>>, vector<1x8x1xf32>,
      %c2_75 = arith.constant 2 : index
      %c0_76 = arith.constant 0 : index
      %c0_77 = arith.constant 0 : index
      %132 = vector.load %arg11[%c2_75, %c0_76, %c0_77] : memref<4x8x16xf32, #tpu.memory_space<vmem>>, vector<1x8x16xf32>
      %133 = vector.shape_cast %132 : vector<1x8x16xf32> to vector<8x16xf32>
      %134 = vector.broadcast %119 : vector<8x1xf32> to vector<8x16xf32>
      %135 = arith.mulf %134, %133 : vector<8x16xf32>
      %cst_78 = arith.constant dense<0.000000e+00> : vector<8x16xf32>
      %136 = tpu.matmul %122, %108, %cst_78 {dimension_numbers = #tpu.dot_dimension_numbers<[1], [0], [0], [1], [0, 0, 1, 1], [], []>} : vector<8x8xf32>, vector<8x16xf32>, vector<8x16xf32> -> vector<8x16xf32>
      %137 = arith.addf %135, %136 : vector<8x16xf32>
      %c2_79 = arith.constant 2 : index
      %c0_80 = arith.constant 0 : index
      %c0_81 = arith.constant 0 : index
      %138 = vector.load %arg11[%c2_79, %c0_80, %c0_81] : memref<4x8x16xf32, #tpu.memory_space<vmem>>, vector<1x8x16xf32>
      %139 = vector.shape_cast %138 : vector<1x8x16xf32> to vector<8x16xf32>
      %140 = vector.shape_cast %137 : vector<8x16xf32> to vector<1x8x16xf32>
      tpu.vector_store %arg11[%c2_79, %c0_80, %c0_81], %140 {strides = array<i32>} : memref<4x8x16xf32, #tpu.memory_space<vmem>>, vector<1x8x16xf32>,
      %c2_82 = arith.constant 2 : index
      %c0_83 = arith.constant 0 : index
      %c0_84 = arith.constant 0 : index
      %141 = vector.load %arg9[%c2_82, %c0_83, %c0_84] : memref<4x8x1xf32, #tpu.memory_space<vmem>>, vector<1x8x1xf32>
      %142 = vector.shape_cast %141 : vector<1x8x1xf32> to vector<8x1xf32>
      %143 = vector.shape_cast %117 : vector<8x1xf32> to vector<1x8x1xf32>
      tpu.vector_store %arg9[%c2_82, %c0_83, %c0_84], %143 {strides = array<i32>} : memref<4x8x1xf32, #tpu.memory_space<vmem>>, vector<1x8x1xf32>,
      %144 = vector.extract_strided_slice %16 {offsets = [0, 48], sizes = [8, 16], strides = [1, 1]} : vector<8x64xf32> to vector<8x16xf32>
      %145 = arith.mulf %144, %12 : vector<8x16xf32>
      %cst_85 = arith.constant dense<0.000000e+00> : vector<8x8xf32>
      %146 = tpu.matmul %145, %107, %cst_85 {dimension_numbers = #tpu.dot_dimension_numbers<[1], [1], [0], [0], [0, 0, 1, 0], [], []>} : vector<8x16xf32>, vector<8x16xf32>, vector<8x8xf32> -> vector<8x8xf32>
      %147 = arith.addf %146, %32 : vector<8x8xf32>
      %c3 = arith.constant 3 : index
      %c0_86 = arith.constant 0 : index
      %c0_87 = arith.constant 0 : index
      %148 = vector.load %arg9[%c3, %c0_86, %c0_87] : memref<4x8x1xf32, #tpu.memory_space<vmem>>, vector<1x8x1xf32>
      %149 = vector.shape_cast %148 : vector<1x8x1xf32> to vector<8x1xf32>
      %cst_88 = arith.constant dense<0xFF800000> : vector<8xf32>
      %150 = vector.multi_reduction <maximumf>, %147, %cst_88 [1] : vector<8x8xf32> to vector<8xf32>
      %151 = vector.shape_cast %150 : vector<8xf32> to vector<8x1xf32>
      %152 = arith.maximumf %149, %151 : vector<8x1xf32>
      %153 = arith.subf %149, %152 : vector<8x1xf32>
      %154 = math.exp %153 : vector<8x1xf32>
      %155 = vector.broadcast %152 : vector<8x1xf32> to vector<8x8xf32>
      %156 = arith.subf %147, %155 : vector<8x8xf32>
      %157 = math.exp %156 : vector<8x8xf32>
      %c3_89 = arith.constant 3 : index
      %c0_90 = arith.constant 0 : index
      %c0_91 = arith.constant 0 : index
      %158 = vector.load %arg10[%c3_89, %c0_90, %c0_91] : memref<4x8x1xf32, #tpu.memory_space<vmem>>, vector<1x8x1xf32>
      %159 = vector.shape_cast %158 : vector<1x8x1xf32> to vector<8x1xf32>
      %160 = arith.mulf %154, %159 : vector<8x1xf32>
      %cst_92 = arith.constant dense<0.000000e+00> : vector<8xf32>
      %161 = vector.multi_reduction <add>, %157, %cst_92 [1] : vector<8x8xf32> to vector<8xf32>
      %162 = vector.shape_cast %161 : vector<8xf32> to vector<8x1xf32>
      %163 = arith.addf %160, %162 : vector<8x1xf32>
      %c3_93 = arith.constant 3 : index
      %c0_94 = arith.constant 0 : index
      %c0_95 = arith.constant 0 : index
      %164 = vector.load %arg10[%c3_93, %c0_94, %c0_95] : memref<4x8x1xf32, #tpu.memory_space<vmem>>, vector<1x8x1xf32>
      %165 = vector.shape_cast %164 : vector<1x8x1xf32> to vector<8x1xf32>
      %166 = vector.shape_cast %163 : vector<8x1xf32> to vector<1x8x1xf32>
      tpu.vector_store %arg10[%c3_93, %c0_94, %c0_95], %166 {strides = array<i32>} : memref<4x8x1xf32, #tpu.memory_space<vmem>>, vector<1x8x1xf32>,
      %c3_96 = arith.constant 3 : index
      %c0_97 = arith.constant 0 : index
      %c0_98 = arith.constant 0 : index
      %167 = vector.load %arg11[%c3_96, %c0_97, %c0_98] : memref<4x8x16xf32, #tpu.memory_space<vmem>>, vector<1x8x16xf32>
      %168 = vector.shape_cast %167 : vector<1x8x16xf32> to vector<8x16xf32>
      %169 = vector.broadcast %154 : vector<8x1xf32> to vector<8x16xf32>
      %170 = arith.mulf %169, %168 : vector<8x16xf32>
      %cst_99 = arith.constant dense<0.000000e+00> : vector<8x16xf32>
      %171 = tpu.matmul %157, %108, %cst_99 {dimension_numbers = #tpu.dot_dimension_numbers<[1], [0], [0], [1], [0, 0, 1, 1], [], []>} : vector<8x8xf32>, vector<8x16xf32>, vector<8x16xf32> -> vector<8x16xf32>
      %172 = arith.addf %170, %171 : vector<8x16xf32>
      %c3_100 = arith.constant 3 : index
      %c0_101 = arith.constant 0 : index
      %c0_102 = arith.constant 0 : index
      %173 = vector.load %arg11[%c3_100, %c0_101, %c0_102] : memref<4x8x16xf32, #tpu.memory_space<vmem>>, vector<1x8x16xf32>
      %174 = vector.shape_cast %173 : vector<1x8x16xf32> to vector<8x16xf32>
      %175 = vector.shape_cast %172 : vector<8x16xf32> to vector<1x8x16xf32>
      tpu.vector_store %arg11[%c3_100, %c0_101, %c0_102], %175 {strides = array<i32>} : memref<4x8x16xf32, #tpu.memory_space<vmem>>, vector<1x8x16xf32>,
      %c3_103 = arith.constant 3 : index
      %c0_104 = arith.constant 0 : index
      %c0_105 = arith.constant 0 : index
      %176 = vector.load %arg9[%c3_103, %c0_104, %c0_105] : memref<4x8x1xf32, #tpu.memory_space<vmem>>, vector<1x8x1xf32>
      %177 = vector.shape_cast %176 : vector<1x8x1xf32> to vector<8x1xf32>
      %178 = vector.shape_cast %152 : vector<8x1xf32> to vector<1x8x1xf32>
      tpu.vector_store %arg9[%c3_103, %c0_104, %c0_105], %178 {strides = array<i32>} : memref<4x8x1xf32, #tpu.memory_space<vmem>>, vector<1x8x1xf32>,
    } else {
    }
    %c0_i32_2 = arith.constant 0 : i32
    %6 = arith.cmpi eq, %arg2, %c0_i32_2 : i32
    %7 = arith.extui %6 : i1 to i32
    %c0_i32_3 = arith.constant 0 : i32
    %8 = arith.cmpi ne, %7, %c0_i32_3 : i32
    scf.if %8 {
      %c0 = arith.constant 0 : index
      %c0_4 = arith.constant 0 : index
      %c0_5 = arith.constant 0 : index
      %9 = vector.load %arg11[%c0, %c0_4, %c0_5] : memref<4x8x16xf32, #tpu.memory_space<vmem>>, vector<1x8x16xf32>
      %10 = vector.shape_cast %9 : vector<1x8x16xf32> to vector<8x16xf32>
      %c0_6 = arith.constant 0 : index
      %c0_7 = arith.constant 0 : index
      %c0_8 = arith.constant 0 : index
      %11 = vector.load %arg10[%c0_6, %c0_7, %c0_8] : memref<4x8x1xf32, #tpu.memory_space<vmem>>, vector<1x8x1xf32>
      %12 = vector.shape_cast %11 : vector<1x8x1xf32> to vector<8x1xf32>
      %13 = tpu.reciprocal %12 {approx = true} : vector<8x1xf32> -> vector<8x1xf32>
      %14 = vector.broadcast %13 : vector<8x1xf32> to vector<8x16xf32>
      %15 = arith.mulf %10, %14 : vector<8x16xf32>
      %c1 = arith.constant 1 : index
      %c0_9 = arith.constant 0 : index
      %c0_10 = arith.constant 0 : index
      %16 = vector.load %arg11[%c1, %c0_9, %c0_10] : memref<4x8x16xf32, #tpu.memory_space<vmem>>, vector<1x8x16xf32>
      %17 = vector.shape_cast %16 : vector<1x8x16xf32> to vector<8x16xf32>
      %c1_11 = arith.constant 1 : index
      %c0_12 = arith.constant 0 : index
      %c0_13 = arith.constant 0 : index
      %18 = vector.load %arg10[%c1_11, %c0_12, %c0_13] : memref<4x8x1xf32, #tpu.memory_space<vmem>>, vector<1x8x1xf32>
      %19 = vector.shape_cast %18 : vector<1x8x1xf32> to vector<8x1xf32>
      %20 = tpu.reciprocal %19 {approx = true} : vector<8x1xf32> -> vector<8x1xf32>
      %21 = vector.broadcast %20 : vector<8x1xf32> to vector<8x16xf32>
      %22 = arith.mulf %17, %21 : vector<8x16xf32>
      %c2 = arith.constant 2 : index
      %c0_14 = arith.constant 0 : index
      %c0_15 = arith.constant 0 : index
      %23 = vector.load %arg11[%c2, %c0_14, %c0_15] : memref<4x8x16xf32, #tpu.memory_space<vmem>>, vector<1x8x16xf32>
      %24 = vector.shape_cast %23 : vector<1x8x16xf32> to vector<8x16xf32>
      %c2_16 = arith.constant 2 : index
      %c0_17 = arith.constant 0 : index
      %c0_18 = arith.constant 0 : index
      %25 = vector.load %arg10[%c2_16, %c0_17, %c0_18] : memref<4x8x1xf32, #tpu.memory_space<vmem>>, vector<1x8x1xf32>
      %26 = vector.shape_cast %25 : vector<1x8x1xf32> to vector<8x1xf32>
      %27 = tpu.reciprocal %26 {approx = true} : vector<8x1xf32> -> vector<8x1xf32>
      %28 = vector.broadcast %27 : vector<8x1xf32> to vector<8x16xf32>
      %29 = arith.mulf %24, %28 : vector<8x16xf32>
      %c3 = arith.constant 3 : index
      %c0_19 = arith.constant 0 : index
      %c0_20 = arith.constant 0 : index
      %30 = vector.load %arg11[%c3, %c0_19, %c0_20] : memref<4x8x16xf32, #tpu.memory_space<vmem>>, vector<1x8x16xf32>
      %31 = vector.shape_cast %30 : vector<1x8x16xf32> to vector<8x16xf32>
      %c3_21 = arith.constant 3 : index
      %c0_22 = arith.constant 0 : index
      %c0_23 = arith.constant 0 : index
      %32 = vector.load %arg10[%c3_21, %c0_22, %c0_23] : memref<4x8x1xf32, #tpu.memory_space<vmem>>, vector<1x8x1xf32>
      %33 = vector.shape_cast %32 : vector<1x8x1xf32> to vector<8x1xf32>
      %34 = tpu.reciprocal %33 {approx = true} : vector<8x1xf32> -> vector<8x1xf32>
      %35 = vector.broadcast %34 : vector<8x1xf32> to vector<8x16xf32>
      %36 = arith.mulf %31, %35 : vector<8x16xf32>
      %37 = tpu.concatenate %15, %22, %29, %36 in 1 : vector<8x16xf32>, vector<8x16xf32>, vector<8x16xf32>, vector<8x16xf32> -> vector<8x64xf32>
      %c0_24 = arith.constant 0 : index
      %c0_25 = arith.constant 0 : index
      %c0_26 = arith.constant 0 : index
      %38 = vector.load %arg8[%c0_24, %c0_25, %c0_26] : memref<1x8x64xf32, #tpu.memory_space<vmem>>, vector<1x8x64xf32>
      %39 = vector.shape_cast %38 : vector<1x8x64xf32> to vector<8x64xf32>
      %40 = vector.shape_cast %37 : vector<8x64xf32> to vector<1x8x64xf32>
      tpu.vector_store %arg8[%c0_24, %c0_25, %c0_26], %40 {strides = array<i32>} : memref<1x8x64xf32, #tpu.memory_space<vmem>>, vector<1x8x64xf32>,
    } else {
    }
    return
  }
  func.func @transform_0(%arg0: i32, %arg1: i32, %arg2: i32) -> (i32, i32, i32) {
    %c0_i32 = arith.constant 0 : i32
    %c0_i32_0 = arith.constant 0 : i32
    return %arg0, %arg1, %c0_i32 : i32, i32, i32
  }
  func.func @transform_1(%arg0: i32, %arg1: i32, %arg2: i32) -> (i32, i32, i32) {
    %c0_i32 = arith.constant 0 : i32
    %c0_i32_0 = arith.constant 0 : i32
    return %arg0, %arg2, %c0_i32 : i32, i32, i32
  }
  func.func @transform_2(%arg0: i32, %arg1: i32, %arg2: i32) -> (i32, i32, i32) {
    %c0_i32 = arith.constant 0 : i32
    %c0_i32_0 = arith.constant 0 : i32
    return %arg0, %arg2, %c0_i32 : i32, i32, i32
  }
  func.func @transform_3(%arg0: i32, %arg1: i32, %arg2: i32) -> (i32, i32, i32) {
    %c0_i32 = arith.constant 0 : i32
    %c0_i32_0 = arith.constant 0 : i32
    return %arg0, %arg1, %c0_i32 : i32, i32, i32
  }
  func.func @transform_4(%arg0: i32, %arg1: i32, %arg2: i32) -> (i32, i32, i32) {
    %c0_i32 = arith.constant 0 : i32
    %c0_i32_0 = arith.constant 0 : i32
    return %arg0, %arg2, %c0_i32 : i32, i32, i32
  }
  func.func @transform_5(%arg0: i32, %arg1: i32, %arg2: i32) -> (i32, i32, i32) {
    %c0_i32 = arith.constant 0 : i32
    %c0_i32_0 = arith.constant 0 : i32
    return %arg0, %arg1, %c0_i32 : i32, i32, i32
  }
}

module attributes {stable_mosaic.version = 11 : i64} {
  func.func @_gate_up_kernel(%arg0: i32, %arg1: i32, %arg2: i32, %arg3: memref<16x32xf32, #tpu.memory_space<vmem>>, %arg4: memref<32x128xf32, #tpu.memory_space<vmem>>, %arg5: memref<32x128xf32, #tpu.memory_space<vmem>>, %arg6: memref<16x128xf32, #tpu.memory_space<vmem>>, %arg7: memref<16x128xf32, #tpu.memory_space<vmem>>, %arg8: memref<16x128xf32, #tpu.memory_space<vmem>>) attributes {dimension_semantics = [#tpu.dimension_semantics<parallel>, #tpu.dimension_semantics<parallel>, #tpu.dimension_semantics<arbitrary>], iteration_bounds = array<i64: 1, 1, 1>, scalar_prefetch = 0 : i64, scratch_operands = 2 : i64, tpu.core_type = #tpu.core_type<tc>, window_params = [{transform_indices = @transform_0, window_bounds = array<i64: 16, 32>}, {transform_indices = @transform_1, window_bounds = array<i64: 32, 128>}, {transform_indices = @transform_2, window_bounds = array<i64: 32, 128>}, {transform_indices = @transform_3, window_bounds = array<i64: 16, 128>}]} {
    %c0_i32 = arith.constant 0 : i32
    %0 = arith.cmpi eq, %arg2, %c0_i32 : i32
    %1 = arith.extui %0 : i1 to i32
    %c0_i32_0 = arith.constant 0 : i32
    %2 = arith.cmpi ne, %1, %c0_i32_0 : i32
    scf.if %2 {
      %cst_17 = arith.constant 0.000000e+00 : f32
      %17 = vector.broadcast %cst_17 : f32 to vector<16x128xf32>
      %c0_18 = arith.constant 0 : index
      %c0_19 = arith.constant 0 : index
      %18 = vector.load %arg7[%c0_18, %c0_19] : memref<16x128xf32, #tpu.memory_space<vmem>>, vector<16x128xf32>
      tpu.vector_store %arg7[%c0_18, %c0_19], %17 {strides = array<i32>} : memref<16x128xf32, #tpu.memory_space<vmem>>, vector<16x128xf32>,
      %cst_20 = arith.constant 0.000000e+00 : f32
      %19 = vector.broadcast %cst_20 : f32 to vector<16x128xf32>
      %c0_21 = arith.constant 0 : index
      %c0_22 = arith.constant 0 : index
      %20 = vector.load %arg8[%c0_21, %c0_22] : memref<16x128xf32, #tpu.memory_space<vmem>>, vector<16x128xf32>
      tpu.vector_store %arg8[%c0_21, %c0_22], %19 {strides = array<i32>} : memref<16x128xf32, #tpu.memory_space<vmem>>, vector<16x128xf32>,
    } else {
    }
    %c0 = arith.constant 0 : index
    %c0_1 = arith.constant 0 : index
    %3 = vector.load %arg3[%c0, %c0_1] : memref<16x32xf32, #tpu.memory_space<vmem>>, vector<16x32xf32>
    %c0_2 = arith.constant 0 : index
    %c0_3 = arith.constant 0 : index
    %4 = vector.load %arg7[%c0_2, %c0_3] : memref<16x128xf32, #tpu.memory_space<vmem>>, vector<16x128xf32>
    %c0_4 = arith.constant 0 : index
    %c0_5 = arith.constant 0 : index
    %5 = vector.load %arg4[%c0_4, %c0_5] : memref<32x128xf32, #tpu.memory_space<vmem>>, vector<32x128xf32>
    %cst = arith.constant dense<0.000000e+00> : vector<16x128xf32>
    %6 = tpu.matmul %3, %5, %cst {dimension_numbers = #tpu.dot_dimension_numbers<[1], [0], [0], [1], [0, 0, 1, 1], [], []>} : vector<16x32xf32>, vector<32x128xf32>, vector<16x128xf32> -> vector<16x128xf32>
    %7 = arith.addf %4, %6 : vector<16x128xf32>
    %c0_6 = arith.constant 0 : index
    %c0_7 = arith.constant 0 : index
    %8 = vector.load %arg7[%c0_6, %c0_7] : memref<16x128xf32, #tpu.memory_space<vmem>>, vector<16x128xf32>
    tpu.vector_store %arg7[%c0_6, %c0_7], %7 {strides = array<i32>} : memref<16x128xf32, #tpu.memory_space<vmem>>, vector<16x128xf32>,
    %c0_8 = arith.constant 0 : index
    %c0_9 = arith.constant 0 : index
    %9 = vector.load %arg8[%c0_8, %c0_9] : memref<16x128xf32, #tpu.memory_space<vmem>>, vector<16x128xf32>
    %c0_10 = arith.constant 0 : index
    %c0_11 = arith.constant 0 : index
    %10 = vector.load %arg5[%c0_10, %c0_11] : memref<32x128xf32, #tpu.memory_space<vmem>>, vector<32x128xf32>
    %cst_12 = arith.constant dense<0.000000e+00> : vector<16x128xf32>
    %11 = tpu.matmul %3, %10, %cst_12 {dimension_numbers = #tpu.dot_dimension_numbers<[1], [0], [0], [1], [0, 0, 1, 1], [], []>} : vector<16x32xf32>, vector<32x128xf32>, vector<16x128xf32> -> vector<16x128xf32>
    %12 = arith.addf %9, %11 : vector<16x128xf32>
    %c0_13 = arith.constant 0 : index
    %c0_14 = arith.constant 0 : index
    %13 = vector.load %arg8[%c0_13, %c0_14] : memref<16x128xf32, #tpu.memory_space<vmem>>, vector<16x128xf32>
    tpu.vector_store %arg8[%c0_13, %c0_14], %12 {strides = array<i32>} : memref<16x128xf32, #tpu.memory_space<vmem>>, vector<16x128xf32>,
    %c0_i32_15 = arith.constant 0 : i32
    %14 = arith.cmpi eq, %arg2, %c0_i32_15 : i32
    %15 = arith.extui %14 : i1 to i32
    %c0_i32_16 = arith.constant 0 : i32
    %16 = arith.cmpi ne, %15, %c0_i32_16 : i32
    scf.if %16 {
      %c0_17 = arith.constant 0 : index
      %c0_18 = arith.constant 0 : index
      %17 = vector.load %arg7[%c0_17, %c0_18] : memref<16x128xf32, #tpu.memory_space<vmem>>, vector<16x128xf32>
      %cst_19 = arith.constant 5.000000e-01 : f32
      %18 = vector.broadcast %cst_19 : f32 to vector<16x128xf32>
      %19 = arith.mulf %18, %17 : vector<16x128xf32>
      %20 = arith.mulf %17, %17 : vector<16x128xf32>
      %21 = arith.mulf %20, %17 : vector<16x128xf32>
      %cst_20 = arith.constant 4.471500e-02 : f32
      %22 = vector.broadcast %cst_20 : f32 to vector<16x128xf32>
      %23 = arith.mulf %22, %21 : vector<16x128xf32>
      %24 = arith.addf %17, %23 : vector<16x128xf32>
      %cst_21 = arith.constant 0.797884583 : f32
      %25 = vector.broadcast %cst_21 : f32 to vector<16x128xf32>
      %26 = arith.mulf %25, %24 : vector<16x128xf32>
      %27 = math.tanh %26 : vector<16x128xf32>
      %cst_22 = arith.constant 1.000000e+00 : f32
      %28 = vector.broadcast %cst_22 : f32 to vector<16x128xf32>
      %29 = arith.addf %28, %27 : vector<16x128xf32>
      %30 = arith.mulf %19, %29 : vector<16x128xf32>
      %c0_23 = arith.constant 0 : index
      %c0_24 = arith.constant 0 : index
      %31 = vector.load %arg8[%c0_23, %c0_24] : memref<16x128xf32, #tpu.memory_space<vmem>>, vector<16x128xf32>
      %32 = arith.mulf %30, %31 : vector<16x128xf32>
      %c0_25 = arith.constant 0 : index
      %c0_26 = arith.constant 0 : index
      %33 = vector.load %arg6[%c0_25, %c0_26] : memref<16x128xf32, #tpu.memory_space<vmem>>, vector<16x128xf32>
      tpu.vector_store %arg6[%c0_25, %c0_26], %32 {strides = array<i32>} : memref<16x128xf32, #tpu.memory_space<vmem>>, vector<16x128xf32>,
    } else {
    }
    return
  }
  func.func @transform_0(%arg0: i32, %arg1: i32, %arg2: i32) -> (i32, i32) {
    %c0_i32 = arith.constant 0 : i32
    return %arg0, %arg2 : i32, i32
  }
  func.func @transform_1(%arg0: i32, %arg1: i32, %arg2: i32) -> (i32, i32) {
    %c0_i32 = arith.constant 0 : i32
    return %arg2, %arg1 : i32, i32
  }
  func.func @transform_2(%arg0: i32, %arg1: i32, %arg2: i32) -> (i32, i32) {
    %c0_i32 = arith.constant 0 : i32
    return %arg2, %arg1 : i32, i32
  }
  func.func @transform_3(%arg0: i32, %arg1: i32, %arg2: i32) -> (i32, i32) {
    %c0_i32 = arith.constant 0 : i32
    return %arg0, %arg1 : i32, i32
  }
}

module attributes {stable_mosaic.version = 11 : i64} {
  func.func @_matmul_residual_kernel(%arg0: i32, %arg1: i32, %arg2: i32, %arg3: memref<16x64xf32, #tpu.memory_space<vmem>>, %arg4: memref<64x32xf32, #tpu.memory_space<vmem>>, %arg5: memref<16x32xf32, #tpu.memory_space<vmem>>, %arg6: memref<16x32xf32, #tpu.memory_space<vmem>>, %arg7: memref<16x32xf32, #tpu.memory_space<vmem>>) attributes {dimension_semantics = [#tpu.dimension_semantics<parallel>, #tpu.dimension_semantics<parallel>, #tpu.dimension_semantics<arbitrary>], iteration_bounds = array<i64: 1, 1, 1>, scalar_prefetch = 0 : i64, scratch_operands = 1 : i64, tpu.core_type = #tpu.core_type<tc>, window_params = [{transform_indices = @transform_0, window_bounds = array<i64: 16, 64>}, {transform_indices = @transform_1, window_bounds = array<i64: 64, 32>}, {transform_indices = @transform_2, window_bounds = array<i64: 16, 32>}, {transform_indices = @transform_3, window_bounds = array<i64: 16, 32>}]} {
    %c0_i32 = arith.constant 0 : i32
    %0 = arith.cmpi eq, %arg2, %c0_i32 : i32
    %1 = arith.extui %0 : i1 to i32
    %c0_i32_0 = arith.constant 0 : i32
    %2 = arith.cmpi ne, %1, %c0_i32_0 : i32
    scf.if %2 {
      %cst_10 = arith.constant 0.000000e+00 : f32
      %12 = vector.broadcast %cst_10 : f32 to vector<16x32xf32>
      %c0_11 = arith.constant 0 : index
      %c0_12 = arith.constant 0 : index
      %13 = vector.load %arg7[%c0_11, %c0_12] : memref<16x32xf32, #tpu.memory_space<vmem>>, vector<16x32xf32>
      tpu.vector_store %arg7[%c0_11, %c0_12], %12 {strides = array<i32>} : memref<16x32xf32, #tpu.memory_space<vmem>>, vector<16x32xf32>,
    } else {
    }
    %c0 = arith.constant 0 : index
    %c0_1 = arith.constant 0 : index
    %3 = vector.load %arg7[%c0, %c0_1] : memref<16x32xf32, #tpu.memory_space<vmem>>, vector<16x32xf32>
    %c0_2 = arith.constant 0 : index
    %c0_3 = arith.constant 0 : index
    %4 = vector.load %arg3[%c0_2, %c0_3] : memref<16x64xf32, #tpu.memory_space<vmem>>, vector<16x64xf32>
    %c0_4 = arith.constant 0 : index
    %c0_5 = arith.constant 0 : index
    %5 = vector.load %arg4[%c0_4, %c0_5] : memref<64x32xf32, #tpu.memory_space<vmem>>, vector<64x32xf32>
    %cst = arith.constant dense<0.000000e+00> : vector<16x32xf32>
    %6 = tpu.matmul %4, %5, %cst {dimension_numbers = #tpu.dot_dimension_numbers<[1], [0], [0], [1], [0, 0, 1, 1], [], []>} : vector<16x64xf32>, vector<64x32xf32>, vector<16x32xf32> -> vector<16x32xf32>
    %7 = arith.addf %3, %6 : vector<16x32xf32>
    %c0_6 = arith.constant 0 : index
    %c0_7 = arith.constant 0 : index
    %8 = vector.load %arg7[%c0_6, %c0_7] : memref<16x32xf32, #tpu.memory_space<vmem>>, vector<16x32xf32>
    tpu.vector_store %arg7[%c0_6, %c0_7], %7 {strides = array<i32>} : memref<16x32xf32, #tpu.memory_space<vmem>>, vector<16x32xf32>,
    %c0_i32_8 = arith.constant 0 : i32
    %9 = arith.cmpi eq, %arg2, %c0_i32_8 : i32
    %10 = arith.extui %9 : i1 to i32
    %c0_i32_9 = arith.constant 0 : i32
    %11 = arith.cmpi ne, %10, %c0_i32_9 : i32
    scf.if %11 {
      %c0_10 = arith.constant 0 : index
      %c0_11 = arith.constant 0 : index
      %12 = vector.load %arg7[%c0_10, %c0_11] : memref<16x32xf32, #tpu.memory_space<vmem>>, vector<16x32xf32>
      %c0_12 = arith.constant 0 : index
      %c0_13 = arith.constant 0 : index
      %13 = vector.load %arg5[%c0_12, %c0_13] : memref<16x32xf32, #tpu.memory_space<vmem>>, vector<16x32xf32>
      %14 = arith.addf %12, %13 : vector<16x32xf32>
      %c0_14 = arith.constant 0 : index
      %c0_15 = arith.constant 0 : index
      %15 = vector.load %arg6[%c0_14, %c0_15] : memref<16x32xf32, #tpu.memory_space<vmem>>, vector<16x32xf32>
      tpu.vector_store %arg6[%c0_14, %c0_15], %14 {strides = array<i32>} : memref<16x32xf32, #tpu.memory_space<vmem>>, vector<16x32xf32>,
    } else {
    }
    return
  }
  func.func @transform_0(%arg0: i32, %arg1: i32, %arg2: i32) -> (i32, i32) {
    %c0_i32 = arith.constant 0 : i32
    return %arg0, %arg2 : i32, i32
  }
  func.func @transform_1(%arg0: i32, %arg1: i32, %arg2: i32) -> (i32, i32) {
    %c0_i32 = arith.constant 0 : i32
    return %arg2, %arg1 : i32, i32
  }
  func.func @transform_2(%arg0: i32, %arg1: i32, %arg2: i32) -> (i32, i32) {
    %c0_i32 = arith.constant 0 : i32
    return %arg0, %arg1 : i32, i32
  }
  func.func @transform_3(%arg0: i32, %arg1: i32, %arg2: i32) -> (i32, i32) {
    %c0_i32 = arith.constant 0 : i32
    return %arg0, %arg1 : i32, i32
  }
}

module attributes {stable_mosaic.version = 11 : i64} {
  func.func @_matmul_residual_kernel(%arg0: i32, %arg1: i32, %arg2: i32, %arg3: memref<16x128xf32, #tpu.memory_space<vmem>>, %arg4: memref<128x32xf32, #tpu.memory_space<vmem>>, %arg5: memref<16x32xf32, #tpu.memory_space<vmem>>, %arg6: memref<16x32xf32, #tpu.memory_space<vmem>>, %arg7: memref<16x32xf32, #tpu.memory_space<vmem>>) attributes {dimension_semantics = [#tpu.dimension_semantics<parallel>, #tpu.dimension_semantics<parallel>, #tpu.dimension_semantics<arbitrary>], iteration_bounds = array<i64: 1, 1, 1>, scalar_prefetch = 0 : i64, scratch_operands = 1 : i64, tpu.core_type = #tpu.core_type<tc>, window_params = [{transform_indices = @transform_0, window_bounds = array<i64: 16, 128>}, {transform_indices = @transform_1, window_bounds = array<i64: 128, 32>}, {transform_indices = @transform_2, window_bounds = array<i64: 16, 32>}, {transform_indices = @transform_3, window_bounds = array<i64: 16, 32>}]} {
    %c0_i32 = arith.constant 0 : i32
    %0 = arith.cmpi eq, %arg2, %c0_i32 : i32
    %1 = arith.extui %0 : i1 to i32
    %c0_i32_0 = arith.constant 0 : i32
    %2 = arith.cmpi ne, %1, %c0_i32_0 : i32
    scf.if %2 {
      %cst_10 = arith.constant 0.000000e+00 : f32
      %12 = vector.broadcast %cst_10 : f32 to vector<16x32xf32>
      %c0_11 = arith.constant 0 : index
      %c0_12 = arith.constant 0 : index
      %13 = vector.load %arg7[%c0_11, %c0_12] : memref<16x32xf32, #tpu.memory_space<vmem>>, vector<16x32xf32>
      tpu.vector_store %arg7[%c0_11, %c0_12], %12 {strides = array<i32>} : memref<16x32xf32, #tpu.memory_space<vmem>>, vector<16x32xf32>,
    } else {
    }
    %c0 = arith.constant 0 : index
    %c0_1 = arith.constant 0 : index
    %3 = vector.load %arg7[%c0, %c0_1] : memref<16x32xf32, #tpu.memory_space<vmem>>, vector<16x32xf32>
    %c0_2 = arith.constant 0 : index
    %c0_3 = arith.constant 0 : index
    %4 = vector.load %arg3[%c0_2, %c0_3] : memref<16x128xf32, #tpu.memory_space<vmem>>, vector<16x128xf32>
    %c0_4 = arith.constant 0 : index
    %c0_5 = arith.constant 0 : index
    %5 = vector.load %arg4[%c0_4, %c0_5] : memref<128x32xf32, #tpu.memory_space<vmem>>, vector<128x32xf32>
    %cst = arith.constant dense<0.000000e+00> : vector<16x32xf32>
    %6 = tpu.matmul %4, %5, %cst {dimension_numbers = #tpu.dot_dimension_numbers<[1], [0], [0], [1], [0, 0, 1, 1], [], []>} : vector<16x128xf32>, vector<128x32xf32>, vector<16x32xf32> -> vector<16x32xf32>
    %7 = arith.addf %3, %6 : vector<16x32xf32>
    %c0_6 = arith.constant 0 : index
    %c0_7 = arith.constant 0 : index
    %8 = vector.load %arg7[%c0_6, %c0_7] : memref<16x32xf32, #tpu.memory_space<vmem>>, vector<16x32xf32>
    tpu.vector_store %arg7[%c0_6, %c0_7], %7 {strides = array<i32>} : memref<16x32xf32, #tpu.memory_space<vmem>>, vector<16x32xf32>,
    %c0_i32_8 = arith.constant 0 : i32
    %9 = arith.cmpi eq, %arg2, %c0_i32_8 : i32
    %10 = arith.extui %9 : i1 to i32
    %c0_i32_9 = arith.constant 0 : i32
    %11 = arith.cmpi ne, %10, %c0_i32_9 : i32
    scf.if %11 {
      %c0_10 = arith.constant 0 : index
      %c0_11 = arith.constant 0 : index
      %12 = vector.load %arg7[%c0_10, %c0_11] : memref<16x32xf32, #tpu.memory_space<vmem>>, vector<16x32xf32>
      %c0_12 = arith.constant 0 : index
      %c0_13 = arith.constant 0 : index
      %13 = vector.load %arg5[%c0_12, %c0_13] : memref<16x32xf32, #tpu.memory_space<vmem>>, vector<16x32xf32>
      %14 = arith.addf %12, %13 : vector<16x32xf32>
      %c0_14 = arith.constant 0 : index
      %c0_15 = arith.constant 0 : index
      %15 = vector.load %arg6[%c0_14, %c0_15] : memref<16x32xf32, #tpu.memory_space<vmem>>, vector<16x32xf32>
      tpu.vector_store %arg6[%c0_14, %c0_15], %14 {strides = array<i32>} : memref<16x32xf32, #tpu.memory_space<vmem>>, vector<16x32xf32>,
    } else {
    }
    return
  }
  func.func @transform_0(%arg0: i32, %arg1: i32, %arg2: i32) -> (i32, i32) {
    %c0_i32 = arith.constant 0 : i32
    return %arg0, %arg2 : i32, i32
  }
  func.func @transform_1(%arg0: i32, %arg1: i32, %arg2: i32) -> (i32, i32) {
    %c0_i32 = arith.constant 0 : i32
    return %arg2, %arg1 : i32, i32
  }
  func.func @transform_2(%arg0: i32, %arg1: i32, %arg2: i32) -> (i32, i32) {
    %c0_i32 = arith.constant 0 : i32
    return %arg0, %arg1 : i32, i32
  }
  func.func @transform_3(%arg0: i32, %arg1: i32, %arg2: i32) -> (i32, i32) {
    %c0_i32 = arith.constant 0 : i32
    return %arg0, %arg1 : i32, i32
  }
}

module attributes {stable_mosaic.version = 11 : i64} {
  func.func @_rmsnorm_kernel(%arg0: i32, %arg1: memref<16x32xf32, #tpu.memory_space<vmem>>, %arg2: memref<1x32xf32, #tpu.memory_space<vmem>>, %arg3: memref<16x32xf32, #tpu.memory_space<vmem>>) attributes {dimension_semantics = [#tpu.dimension_semantics<parallel>], iteration_bounds = array<i64: 1>, scalar_prefetch = 0 : i64, scratch_operands = 0 : i64, tpu.core_type = #tpu.core_type<tc>, window_params = [{transform_indices = @transform_0, window_bounds = array<i64: 16, 32>}, {pipeline_mode = #tpu.pipeline_mode<synchronous>, transform_indices = @transform_1, window_bounds = array<i64: 1, 32>}, {transform_indices = @transform_2, window_bounds = array<i64: 16, 32>}]} {
    %c0 = arith.constant 0 : index
    %c0_0 = arith.constant 0 : index
    %0 = vector.load %arg1[%c0, %c0_0] : memref<16x32xf32, #tpu.memory_space<vmem>>, vector<16x32xf32>
    %1 = arith.mulf %0, %0 : vector<16x32xf32>
    %cst = arith.constant dense<0.000000e+00> : vector<16xf32>
    %2 = vector.multi_reduction <add>, %1, %cst [1] : vector<16x32xf32> to vector<16xf32>
    %3 = vector.shape_cast %2 : vector<16xf32> to vector<16x1xf32>
    %cst_1 = arith.constant 3.200000e+01 : f32
    %4 = vector.broadcast %cst_1 : f32 to vector<16x1xf32>
    %5 = arith.divf %3, %4 : vector<16x1xf32>
    %cst_2 = arith.constant 9.99999997E-7 : f32
    %6 = vector.broadcast %cst_2 : f32 to vector<16x1xf32>
    %7 = arith.addf %5, %6 : vector<16x1xf32>
    %8 = math.rsqrt %7 : vector<16x1xf32>
    %9 = vector.broadcast %8 : vector<16x1xf32> to vector<16x32xf32>
    %10 = arith.mulf %0, %9 : vector<16x32xf32>
    %c0_3 = arith.constant 0 : index
    %c0_4 = arith.constant 0 : index
    %11 = vector.load %arg2[%c0_3, %c0_4] : memref<1x32xf32, #tpu.memory_space<vmem>>, vector<1x32xf32>
    %cst_5 = arith.constant 1.000000e+00 : f32
    %12 = vector.broadcast %cst_5 : f32 to vector<1x32xf32>
    %13 = arith.addf %12, %11 : vector<1x32xf32>
    %14 = vector.broadcast %13 : vector<1x32xf32> to vector<16x32xf32>
    %15 = arith.mulf %10, %14 : vector<16x32xf32>
    %c0_6 = arith.constant 0 : index
    %c0_7 = arith.constant 0 : index
    %16 = vector.load %arg3[%c0_6, %c0_7] : memref<16x32xf32, #tpu.memory_space<vmem>>, vector<16x32xf32>
    tpu.vector_store %arg3[%c0_6, %c0_7], %15 {strides = array<i32>} : memref<16x32xf32, #tpu.memory_space<vmem>>, vector<16x32xf32>,
    return
  }
  func.func @transform_0(%arg0: i32) -> (i32, i32) {
    %c0_i32 = arith.constant 0 : i32
    %c0_i32_0 = arith.constant 0 : i32
    return %arg0, %c0_i32 : i32, i32
  }
  func.func @transform_1(%arg0: i32) -> (i32, i32) {
    %c0_i32 = arith.constant 0 : i32
    %c0_i32_0 = arith.constant 0 : i32
    %c0_i32_1 = arith.constant 0 : i32
    return %c0_i32, %c0_i32_0 : i32, i32
  }
  func.func @transform_2(%arg0: i32) -> (i32, i32) {
    %c0_i32 = arith.constant 0 : i32
    %c0_i32_0 = arith.constant 0 : i32
    return %arg0, %c0_i32 : i32, i32
  }
}

</mosaic_0001>

<bundles_post_ra>
// kernel: gemma_model_forward.16
= control target key start
LH: loop header
LB: loop body
LE: loop exit
PB: predicated region body
PF: predicated region fallthrough
CT: control target
= control target key end

     0   :  { %vm25_vm0 = vcmask 261120   ;;  %s188_s1 = inlined_call_operand.vmem [shape: f32[32,128], index: 1, kind: input, shape index: {}]   ;;  %s189_s0 = inlined_call_operand.vmem [shape: f32[16,32], index: 0, kind: input, shape index: {}]   ;;  %s190_s2 = inlined_call_operand.vmem [shape: f32[16,128], index: 2, kind: output, shape index: {}]  }
   0x1   :  { %v21_v0 = vld [vmem:[%s188_s1] sm:$0xff]  ;;  %v22_v1 = vld [vmem:[%s188_s1 + $0x8] sm:$0xff]  ;;  %v23_v2 = vld [vmem:[%s188_s1 + $0x10] sm:$0xff] }
   0x2   :  { %v141_v3 = vpack.c.bf16 %v22_v1, %v21_v0  ;;  %v24_v4 = vld [vmem:[%s188_s1 + $0x18] sm:$0xff]  ;;  %v19_v5 = vld [vmem:[%s189_s0] sm:$0xff]  ;;  %v20_v7 = vld [vmem:[%s189_s0 + $0x8] sm:$0xff] }
   0x3   :  { %v145_v6 = vpack.c.bf16 %v24_v4, %v23_v2  ;;  %138 = vmatprep.mubr.msk.f32.mxu0 %vm25_vm0, %v19_v5 }
   0x4   :  { %142 = vmatprep.subr.bf16.mxu0 %v141_v3 }
   0x5   :  { %144 = vmatpush3.bf16.msra.mxu0 %v141_v3 }
   0x6   :  { %146 = vmatprep.subr.bf16.mxu0 %v145_v6 }
   0x9   :  { %148 = vmatpush3.bf16.msra.mxu0 %v145_v6 }
   0xc   :  { %139 = vmatmul.mubr.msk.f32.vlgmr.msra.gmra.mrb[0].mxu0 %vm25_vm0, %v20_v7 }
  0xdf   :  { %v140_v8 = vpop.f32.mrb[0].mxu0 }
  0xe0   :  { %117 = vst [vmem:[%s190_s2 + $0x8] sm:$0xff] %v140_v8  ;;  %v98_v9 = vpop.f32.mrb[1].mxu0 }
  0xe1   :  { %116 = vst [vmem:[%s190_s2] sm:$0xff] %v98_v9 }

// kernel: gemma_model_forward.15
= control target key start
LH: loop header
LB: loop body
LE: loop exit
PB: predicated region body
PF: predicated region fallthrough
CT: control target
= control target key end

     0   :  { %vm15_vm0 = vcmask 261120   ;;  %v34_v8 = vlaneseq  ;;  %s85_s0 = inlined_call_operand.vmem [shape: f32[16,32], index: 0, kind: input, shape index: {}]   ;;  %s86_s1 = inlined_call_operand.vmem [shape: f32[1,32], index: 1, kind: input, shape index: {}]   ;;  %s87_s2 = inlined_call_operand.vmem [shape: f32[16,32], index: 2, kind: output, shape index: {}]  }
   0x1   :  { %v11_v0 = vld [vmem:[%s85_s0] sm:$0xff]  ;;  %v12_v1 = vld [vmem:[%s85_s0 + $0x8] sm:$0xff] }
   0x2   :  { %v13_v2 = vmul.f32 %v11_v0, %v11_v0  ;;  %v14_v3 = vmul.f32 %v12_v1, %v12_v1  ;;  %v35_v12 = vshrl.u32 %v34_v8, 7  ;;  %v31_v13 = vld [vmem:[%s86_s1] sm:$0x1] }
   0x3   :  { %v32_v15 = vadd.f32 1.0, %v31_v13 }
   0x4   :  { %v16_v4 = vsel %vm15_vm0, %v13_v2, 0.0  ;;  %v19_v5 = vsel %vm15_vm0, %v14_v3, 0.0  ;;  %v36_v16 = vsub.s32 0, %v35_v12 }
   0x5   :  { %17 = vadd.xlane.f32.xlu0 %v16_v4 }
   0x6   :  { %v37_v17 = vrot.slane %v32_v15, %v36_v16 }
   0x9   :  { %20 = vadd.xlane.f32.xlu0 %v19_v5 }
  0x92   :  { %v18_v6 = vpop.xlane.xlu0 %17 }
  0x93   :  { %v23_v7 = vmul.f32 0.03125, %v18_v6 }
  0x95   :  { %v25_v9 = vadd.f32 1e-06, %v23_v7 }
  0x96   :  { %v21_v10 = vpop.xlane.xlu0 %20 }
  0x97   :  { %47 = vrsqrt.f32 %v25_v9  ;;  %v24_v11 = vmul.f32 0.03125, %v21_v10 }
  0x99   :  { %v26_v14 = vadd.f32 1e-06, %v24_v11 }
  0x9b   :  { %49 = vrsqrt.f32 %v26_v14 }
  0xa1   :  { %v48_v18 = vpop.eup %47 }
  0xa2   :  { %v29_v19 = vmul.f32 %v48_v18, %v11_v0 }
  0xa4   :  { %v39_v20 = vmul.f32 %v37_v17, %v29_v19 }
  0xa5   :  { %v50_v21 = vpop.eup %49 }
  0xa6   :  { %41 = vst.msk [vmem:[%s87_s2] sm:$0xff] %vm15_vm0, %v39_v20  ;;  %v30_v22 = vmul.f32 %v50_v21, %v12_v1 }
  0xa8   :  { %v40_v23 = vmul.f32 %v37_v17, %v30_v22 }
  0xaa   :  { %42 = vst.msk [vmem:[%s87_s2 + $0x8] sm:$0xff] %vm15_vm0, %v40_v23 }

// kernel: gemma_model_forward.20
= control target key start
LH: loop header
LB: loop body
LE: loop exit
PB: predicated region body
PF: predicated region fallthrough
CT: control target
= control target key end

     0   :  { %vm30_vm0 = vcmask 261120   ;;  %s352_s1 = inlined_call_operand.vmem [shape: f32[32,128], index: 1, kind: input, shape index: {}]   ;;  %s353_s0 = inlined_call_operand.vmem [shape: f32[16,32], index: 0, kind: input, shape index: {}]   ;;  %s354_s2 = inlined_call_operand.vmem [shape: f32[32,128], index: 2, kind: input, shape index: {}]   ;;  %s355_s3 = inlined_call_operand.vmem [shape: f32[16,128], index: 3, kind: output, shape index: {}]  }
   0x1   :  { %v26_v0 = vld [vmem:[%s352_s1] sm:$0xff]  ;;  %v27_v1 = vld [vmem:[%s352_s1 + $0x8] sm:$0xff]  ;;  %v28_v2 = vld [vmem:[%s352_s1 + $0x10] sm:$0xff] }
   0x2   :  { %v272_v3 = vpack.c.bf16 %v27_v1, %v26_v0  ;;  %v29_v4 = vld [vmem:[%s352_s1 + $0x18] sm:$0xff]  ;;  %v22_v5 = vld [vmem:[%s353_s0] sm:$0xff]  ;;  %v119_v8 = vld [vmem:[%s354_s2 + $0x8] sm:$0xff] }
   0x3   :  { %v276_v6 = vpack.c.bf16 %v29_v4, %v28_v2  ;;  %258 = vmatprep.mubr.msk.f32.mxu0 %vm30_vm0, %v22_v5  ;;  %v118_v7 = vld [vmem:[%s354_s2] sm:$0xff]  ;;  %v120_v9 = vld [vmem:[%s354_s2 + $0x10] sm:$0xff]  ;;  %269 = vmatprep.mubr.msk.f32.mxu1 %vm30_vm0, %v22_v5  ;;  %v121_v11 = vld [vmem:[%s354_s2 + $0x18] sm:$0xff] }
   0x4   :  { %273 = vmatprep.subr.bf16.mxu0 %v272_v3  ;;  %v280_v10 = vpack.c.bf16 %v119_v8, %v118_v7  ;;  %v284_v12 = vpack.c.bf16 %v121_v11, %v120_v9  ;;  %v23_v13 = vld [vmem:[%s353_s0 + $0x8] sm:$0xff] }
   0x5   :  { %275 = vmatpush3.bf16.msra.mxu0 %v272_v3 }
   0x6   :  { %277 = vmatprep.subr.bf16.mxu0 %v276_v6  ;;  %281 = vmatprep.subr.bf16.mxu1 %v280_v10 }
   0x7   :  { %283 = vmatpush3.bf16.msra.mxu1 %v280_v10 }
   0x8   :  { %285 = vmatprep.subr.bf16.mxu1 %v284_v12 }
   0x9   :  { %279 = vmatpush3.bf16.msra.mxu0 %v276_v6 }
   0xb   :  { %287 = vmatpush3.bf16.msra.mxu1 %v284_v12 }
   0xc   :  { %259 = vmatmul.mubr.msk.f32.vlgmr.msra.gmra.mrb[0].mxu0 %vm30_vm0, %v23_v13 }
   0xe   :  { %270 = vmatmul.mubr.msk.f32.vlgmr.msra.gmra.mrb[0].mxu1 %vm30_vm0, %v23_v13 }
  0xdf   :  { %v260_v14 = vpop.f32.mrb[0].mxu0 }
  0xe0   :  { %v209_v15 = vmul.f32 %v260_v14, %v260_v14  ;;  %v103_v16 = vpop.f32.mrb[1].mxu0  ;;  %v207_v30 = vmul.f32 0.5, %v260_v14 }
  0xe1   :  { %v208_v17 = vmul.f32 %v103_v16, %v103_v16  ;;  %v271_v18 = vpop.f32.mrb[0].mxu1  ;;  %v206_v32 = vmul.f32 0.5, %v103_v16 }
  0xe2   :  { %v211_v19 = vmul.f32 %v260_v14, %v209_v15  ;;  %v188_v20 = vpop.f32.mrb[1].mxu1 }
  0xe3   :  { %v210_v21 = vmul.f32 %v208_v17, %v103_v16 }
  0xe4   :  { %v213_v22 = vmul.f32 0.044715, %v211_v19 }
  0xe5   :  { %v212_v23 = vmul.f32 0.044715, %v210_v21 }
  0xe6   :  { %v215_v24 = vadd.f32 %v260_v14, %v213_v22 }
  0xe7   :  { %v214_v25 = vadd.f32 %v212_v23, %v103_v16 }
  0xe8   :  { %v217_v26 = vmul.f32 0.7978846, %v215_v24 }
  0xe9   :  { %v216_v27 = vmul.f32 0.7978846, %v214_v25 }
  0xea   :  { %288 = vtanh.f32 %v217_v26 }
  0xeb   :  { %290 = vtanh.f32 %v216_v27 }
  0xf4   :  { %v289_v28 = vpop.eup %288 }
  0xf5   :  { %v291_v29 = vpop.eup %290  ;;  %v221_v31 = vadd.f32 1.0, %v289_v28 }
  0xf6   :  { %v220_v33 = vadd.f32 1.0, %v291_v29 }
  0xf7   :  { %v223_v34 = vmul.f32 %v221_v31, %v207_v30 }
  0xf8   :  { %v222_v35 = vmul.f32 %v220_v33, %v206_v32 }
  0xf9   :  { %v227_v36 = vmul.f32 %v271_v18, %v223_v34 }
  0xfa   :  { %v226_v37 = vmul.f32 %v222_v35, %v188_v20 }
  0xfb   :  { %229 = vst [vmem:[%s355_s3 + $0x8] sm:$0xff] %v227_v36 }
  0xfc   :  { %228 = vst [vmem:[%s355_s3] sm:$0xff] %v226_v37 }

// kernel: gemma_model_forward.18
= control target key start
LH: loop header
LB: loop body
LE: loop exit
PB: predicated region body
PF: predicated region fallthrough
CT: control target
= control target key end

     0   :  { %vm18_vm0 = vcmask 261120   ;;  %vm33_vm1 = vcmask 523264   ;;  %v183_v3 = vmov 0.0   ;;  %s254_s1 = inlined_call_operand.vmem [shape: f32[64,32], index: 1, kind: input, shape index: {}]   ;;  %s255_s0 = inlined_call_operand.vmem [shape: f32[16,64], index: 0, kind: input, shape index: {}]   ;;  %s256_s2 = inlined_call_operand.vmem [shape: f32[16,32], index: 2, kind: input, shape index: {}]   ;;  %s257_s3 = inlined_call_operand.vmem [shape: f32[16,32], index: 3, kind: output, shape index: {}]  }
   0x1   :  { %v25_v0 = vld [vmem:[%s254_s1] sm:$0xff]  ;;  %v26_v1 = vld [vmem:[%s254_s1 + $0x8] sm:$0xff]  ;;  %v27_v2 = vld [vmem:[%s254_s1 + $0x10] sm:$0xff]  ;;  %20 = vst.msk [vmem:[#allocation2 + $0x8] sm:$0xff] %vm18_vm0, %v183_v3 }
   0x2   :  { %19 = vst.msk [vmem:[#allocation2] sm:$0xff] %vm18_vm0, %v183_v3  ;;  %v166_v4 = vpack.c.bf16 %v26_v1, %v25_v0  ;;  %v28_v5 = vld [vmem:[%s254_s1 + $0x18] sm:$0xff]  ;;  %v29_v7 = vld [vmem:[%s254_s1 + $0x20] sm:$0xff]  ;;  %v30_v8 = vld [vmem:[%s254_s1 + $0x28] sm:$0xff] }
   0x3   :  { %v170_v6 = vpack.c.bf16 %v28_v5, %v27_v2  ;;  %v23_v9 = vld [vmem:[%s255_s0] sm:$0xff]  ;;  %v174_v10 = vpack.c.bf16 %v30_v8, %v29_v7  ;;  %v31_v11 = vld [vmem:[%s254_s1 + $0x30] sm:$0xff]  ;;  %v32_v12 = vld [vmem:[%s254_s1 + $0x38] sm:$0xff] }
   0x4   :  { %167 = vmatprep.subr.bf16.mxu0 %v166_v4  ;;  %163 = vmatprep.mubr.msk.f32.mxu0 %vm33_vm1, %v23_v9  ;;  %v178_v13 = vpack.c.bf16 %v32_v12, %v31_v11  ;;  %v24_v14 = vld [vmem:[%s255_s0 + $0x8] sm:$0xff]  ;;  %v125_v22 = vld [vmem:[%s256_s2] sm:$0xff] }
   0x5   :  { %169 = vmatpush3.bf16.msra.mxu0 %v166_v4  ;;  %v126_v21 = vld [vmem:[%s256_s2 + $0x8] sm:$0xff] }
   0x6   :  { %171 = vmatprep.subr.bf16.mxu0 %v170_v6 }
   0x8   :  { %v22_v15 = vld [vmem:[#allocation2 + $0x8] sm:$0xff] }
   0x9   :  { %173 = vmatpush3.bf16.msra.mxu0 %v170_v6  ;;  %v21_v16 = vld [vmem:[#allocation2] sm:$0xff] }
   0xa   :  { %175 = vmatprep.subr.bf16.mxu0 %v174_v10 }
   0xd   :  { %177 = vmatpush3.bf16.msra.mxu0 %v174_v10 }
   0xe   :  { %179 = vmatprep.subr.bf16.mxu0 %v178_v13 }
  0x11   :  { %181 = vmatpush3.bf16.msra.mxu0 %v178_v13 }
  0x14   :  { %164 = vmatmul.mubr.msk.f32.vlgmr.msra.gmra.mrb[0].mxu0 %vm33_vm1, %v24_v14 }
  0xe7   :  { %v165_v17 = vpop.f32.mrb[0].mxu0 }
  0xe8   :  { %v116_v18 = vadd.f32 %v165_v17, %v22_v15  ;;  %v106_v19 = vpop.f32.mrb[1].mxu0 }
  0xe9   :  { %v115_v20 = vadd.f32 %v106_v19, %v21_v16 }
  0xea   :  { %119 = vst.msk [vmem:[#allocation2 + $0x8] sm:$0xff] %vm18_vm0, %v116_v18 }
  0xeb   :  { %118 = vst.msk [vmem:[#allocation2] sm:$0xff] %vm18_vm0, %v115_v20 }
  0xf1   :  { %v124_v23 = vld [vmem:[#allocation2 + $0x8] sm:$0xff] }
  0xf2   :  { %v128_v24 = vadd.f32 %v126_v21, %v124_v23  ;;  %v123_v25 = vld [vmem:[#allocation2] sm:$0xff] }
  0xf3   :  { %v127_v26 = vadd.f32 %v125_v22, %v123_v25 }
  0xf4   :  { %130 = vst.msk [vmem:[%s257_s3 + $0x8] sm:$0xff] %vm18_vm0, %v128_v24 }
  0xf5   :  { %129 = vst.msk [vmem:[%s257_s3] sm:$0xff] %vm18_vm0, %v127_v26 }

// kernel: gemma_model_forward.21
= control target key start
LH: loop header
LB: loop body
LE: loop exit
PB: predicated region body
PF: predicated region fallthrough
CT: control target
= control target key end

     0   :  { %vm18_vm0 = vcmask 261120   ;;  %v222_v3 = vmov 0.0   ;;  %s315_s1 = inlined_call_operand.vmem [shape: f32[128,32], index: 1, kind: input, shape index: {}]   ;;  %s316_s0 = inlined_call_operand.vmem [shape: f32[16,128], index: 0, kind: input, shape index: {}]   ;;  %s317_s2 = inlined_call_operand.vmem [shape: f32[16,32], index: 2, kind: input, shape index: {}]   ;;  %s318_s3 = inlined_call_operand.vmem [shape: f32[16,32], index: 3, kind: output, shape index: {}]  }
   0x1   :  { %v25_v0 = vld [vmem:[%s315_s1] sm:$0xff]  ;;  %v26_v1 = vld [vmem:[%s315_s1 + $0x8] sm:$0xff]  ;;  %v27_v2 = vld [vmem:[%s315_s1 + $0x10] sm:$0xff]  ;;  %20 = vst.msk [vmem:[#allocation2 + $0x8] sm:$0xff] %vm18_vm0, %v222_v3 }
   0x2   :  { %19 = vst.msk [vmem:[#allocation2] sm:$0xff] %vm18_vm0, %v222_v3  ;;  %v189_v4 = vpack.c.bf16 %v26_v1, %v25_v0  ;;  %v28_v5 = vld [vmem:[%s315_s1 + $0x18] sm:$0xff]  ;;  %v29_v7 = vld [vmem:[%s315_s1 + $0x20] sm:$0xff]  ;;  %v30_v8 = vld [vmem:[%s315_s1 + $0x28] sm:$0xff] }
   0x3   :  { %v193_v6 = vpack.c.bf16 %v28_v5, %v27_v2  ;;  %v197_v9 = vpack.c.bf16 %v30_v8, %v29_v7  ;;  %v23_v10 = vld [vmem:[%s316_s0] sm:$0xff]  ;;  %v31_v11 = vld [vmem:[%s315_s1 + $0x30] sm:$0xff]  ;;  %v32_v12 = vld [vmem:[%s315_s1 + $0x38] sm:$0xff] }
   0x4   :  { %190 = vmatprep.subr.bf16.mxu0 %v189_v4  ;;  %186 = vmatprep.mubr.f32.mxu0 %v23_v10  ;;  %v201_v13 = vpack.c.bf16 %v32_v12, %v31_v11  ;;  %v33_v14 = vld [vmem:[%s315_s1 + $0x40] sm:$0xff]  ;;  %v34_v15 = vld [vmem:[%s315_s1 + $0x48] sm:$0xff]  ;;  %v35_v17 = vld [vmem:[%s315_s1 + $0x50] sm:$0xff] }
   0x5   :  { %192 = vmatpush3.bf16.msra.mxu0 %v189_v4  ;;  %v205_v16 = vpack.c.bf16 %v34_v15, %v33_v14  ;;  %v36_v18 = vld [vmem:[%s315_s1 + $0x58] sm:$0xff]  ;;  %v37_v20 = vld [vmem:[%s315_s1 + $0x60] sm:$0xff]  ;;  %v38_v21 = vld [vmem:[%s315_s1 + $0x68] sm:$0xff] }
   0x6   :  { %194 = vmatprep.subr.bf16.mxu0 %v193_v6  ;;  %v209_v19 = vpack.c.bf16 %v36_v18, %v35_v17  ;;  %v213_v22 = vpack.c.bf16 %v38_v21, %v37_v20  ;;  %v39_v23 = vld [vmem:[%s315_s1 + $0x70] sm:$0xff]  ;;  %v40_v24 = vld [vmem:[%s315_s1 + $0x78] sm:$0xff]  ;;  %v24_v26 = vld [vmem:[%s316_s0 + $0x8] sm:$0xff] }
   0x7   :  { %v217_v25 = vpack.c.bf16 %v40_v24, %v39_v23  ;;  %v127_v33 = vld [vmem:[%s317_s2 + $0x8] sm:$0xff]  ;;  %v126_v34 = vld [vmem:[%s317_s2] sm:$0xff] }
   0x8   :  { %v22_v27 = vld [vmem:[#allocation2 + $0x8] sm:$0xff] }
   0x9   :  { %196 = vmatpush3.bf16.msra.mxu0 %v193_v6  ;;  %v21_v28 = vld [vmem:[#allocation2] sm:$0xff] }
   0xa   :  { %198 = vmatprep.subr.bf16.mxu0 %v197_v9 }
   0xd   :  { %200 = vmatpush3.bf16.msra.mxu0 %v197_v9 }
   0xe   :  { %202 = vmatprep.subr.bf16.mxu0 %v201_v13 }
  0x11   :  { %204 = vmatpush3.bf16.msra.mxu0 %v201_v13 }
  0x12   :  { %206 = vmatprep.subr.bf16.mxu0 %v205_v16 }
  0x15   :  { %208 = vmatpush3.bf16.msra.mxu0 %v205_v16 }
  0x16   :  { %210 = vmatprep.subr.bf16.mxu0 %v209_v19 }
  0x19   :  { %212 = vmatpush3.bf16.msra.mxu0 %v209_v19 }
  0x1a   :  { %214 = vmatprep.subr.bf16.mxu0 %v213_v22 }
  0x1d   :  { %216 = vmatpush3.bf16.msra.mxu0 %v213_v22 }
  0x1e   :  { %218 = vmatprep.subr.bf16.mxu0 %v217_v25 }
  0x21   :  { %220 = vmatpush3.bf16.msra.mxu0 %v217_v25 }
  0x24   :  { %187 = vmatmul.mubr.f32.vlgmr.msra.gmra.mrb[0].mxu0 %v24_v26 }
  0xf7   :  { %v188_v29 = vpop.f32.mrb[0].mxu0 }
  0xf8   :  { %v117_v30 = vadd.f32 %v188_v29, %v22_v27  ;;  %v107_v31 = vpop.f32.mrb[1].mxu0 }
  0xf9   :  { %v116_v32 = vadd.f32 %v107_v31, %v21_v28 }
  0xfa   :  { %120 = vst.msk [vmem:[#allocation2 + $0x8] sm:$0xff] %vm18_vm0, %v117_v30 }
  0xfb   :  { %119 = vst.msk [vmem:[#allocation2] sm:$0xff] %vm18_vm0, %v116_v32 }
 0x101   :  { %v125_v35 = vld [vmem:[#allocation2 + $0x8] sm:$0xff] }
 0x102   :  { %v129_v36 = vadd.f32 %v127_v33, %v125_v35  ;;  %v124_v37 = vld [vmem:[#allocation2] sm:$0xff] }
 0x103   :  { %v128_v38 = vadd.f32 %v126_v34, %v124_v37 }
 0x104   :  { %131 = vst.msk [vmem:[%s318_s3 + $0x8] sm:$0xff] %vm18_vm0, %v129_v36 }
 0x105   :  { %130 = vst.msk [vmem:[%s318_s3] sm:$0xff] %vm18_vm0, %v128_v38 }

// kernel: gemma_model_forward.17
= control target key start
LH: loop header
LB: loop body
LE: loop exit
PB: predicated region body
PF: predicated region fallthrough
CT: control target
= control target key end

     0   :  { %s1585_s18 = smov 0   ;;  %s1587_s19 = smov 0   ;;  %s1761_s0 = inlined_call_operand.vmem [shape: f32[2,8,64], index: 0, kind: input, shape index: {}]   ;;  %s1762_s1 = inlined_call_operand.vmem [shape: f32[2,8,32], index: 1, kind: input, shape index: {}]   ;;  %s1763_s2 = inlined_call_operand.vmem [shape: f32[2,8,32], index: 2, kind: input, shape index: {}]   ;;  %s1764_s3 = inlined_call_operand.vmem [shape: f32[2,8,16], index: 3, kind: input, shape index: {}, may-alias: {3,4}]   ;;  %s1765_s4 = inlined_call_operand.vmem [shape: f32[2,8,16], index: 4, kind: input, shape index: {}, may-alias: {3,4}]   ;;  %s1766_s5 = inlined_call_operand.vmem [shape: f32[2,8,64], index: 5, kind: output, shape index: {}]  }
   0x1   :  { %s1589_s20 = smov 0  }
   0x2 LB: > { %s34_s21 = sadd.s32 1, %s1538_s19  ;;  %p1382_p0 = scmp.ge.s32.totalorder %s1542_s20, 1  ;;  %s1542_s20 = sphi %s1589_s20, %s15_s20   ;;  %s1538_s19 = sphi %s1587_s19, %s1768_s19   ;;  %s1534_s18 = sphi %s1585_s18, %s1767_s18  }
   0x3   : > { %p36_p1 = scmp.ge.s32.totalorder %s34_s21, 2  ;;  %p268_p2 = scmp.lt.s32.totalorder %s1542_s20, 3 }
   0x5   : > { %s1770_s21 = smov (%p36_p1, %s34_s21), 0  ;;  %p269_p3 = pnand %p1382_p0, %p268_p2 }
   0x6   : > { %p328_p4 = scmp.lt.s32.totalorder (!%p269_p3), %s1534_s18, 1  ;;  %vm383_vm0 = vcmask (!%p269_p3), 130048   ;;  %v1544_v0 = vmov (!%p269_p3), 0.0   ;;  %vm1545_vm1 = vmmov (!%p269_p3), 0   ;;  %s1546_s10 = smov (!%p269_p3), 16   ;;  %vm374_vm2 = vcmask (!%p269_p3), 7168  }
   0x7   : > { %272 = sbr.rel (%p269_p3) target bundleno = 1451 (0x5ab), region = 40  ;;  %1419 = vmatprep.subr.mxu0 (!%p269_p3), %v1544_v0  ;;  %384 = vst.msk [vmem:[#allocation4] sm:$0xff] (!%p269_p3), %vm383_vm0, %v1544_v0  ;;  %385 = vst.msk [vmem:[#allocation4 + $0x8] sm:$0xff] (!%p269_p3), %vm383_vm0, %v1544_v0  ;;  %1421 = vmatprep.mubr.msk.f32.mxu0 (!%p269_p3), %vm1545_vm1, %v1544_v0  ;;  %s1547_s11 = smov (!%p269_p3), 32   ;;  %v1548_v8 = vmov (!%p269_p3), -inf   ;;  %v399_v9 = vlaneseq (!%p269_p3)  ;;  %vm490_vm4 = vcmask (!%p269_p3), 64512  }
   0x8   : > { %386 = vst.msk [vmem:[#allocation4 + $0x10] sm:$0xff] (!%p269_p3), %vm383_vm0, %v1544_v0  ;;  %387 = vst.msk [vmem:[#allocation4 + $0x18] sm:$0xff] (!%p269_p3), %vm383_vm0, %v1544_v0  ;;  %1424 = vmatprep.subr.mxu1 (!%p269_p3), %v1544_v0  ;;  %1426 = vmatprep.mubr.msk.f32.mxu1 (!%p269_p3), %vm1545_vm1, %v1544_v0  ;;  %s1549_s12 = smov (!%p269_p3), 48   ;;  %v1550_v12 = vmov (!%p269_p3), -1e+30   ;;  %v1551_v18 = vmov (!%p269_p3), 0  }
   0x9   : > { %375 = vst.msk [vmem:[#allocation2] sm:$0xff] (!%p269_p3), %vm374_vm2, %v1548_v8  ;;  %376 = vst.msk [vmem:[#allocation2 + $0x8] sm:$0xff] (!%p269_p3), %vm374_vm2, %v1548_v8  ;;  %v400_v10 = vshrl.u32 (!%p269_p3), %v399_v9, 7  ;;  %v405_v11 = vand.u32 (!%p269_p3), 127, %v399_v9  ;;  %1494 = vset.pattern.permute.xlu1 (!%p269_p3), %v1551_v18  ;;  %1495 = vset.pattern.permute.xlu0 (!%p269_p3), %v1551_v18  ;;  %s1552_s13 = smov (!%p269_p3), 80   ;;  %s1553_s14 = smov (!%p269_p3), 112  }
   0xa   : > { %377 = vst.msk [vmem:[#allocation2 + $0x10] sm:$0xff] (!%p269_p3), %vm374_vm2, %v1548_v8  ;;  %378 = vst.msk [vmem:[#allocation2 + $0x18] sm:$0xff] (!%p269_p3), %vm374_vm2, %v1548_v8  ;;  %vm1235_vm5 = vcmask (!%p269_p3), 261120   ;;  %vm1237_vm6 = vcmask (!%p269_p3), 392192   ;;  %vm1239_vm7 = vcmask (!%p269_p3), 523264  }
   0xb   : > { %379 = vst.msk [vmem:[#allocation3] sm:$0xff] (!%p269_p3), %vm374_vm2, %v1544_v0  ;;  %380 = vst.msk [vmem:[#allocation3 + $0x8] sm:$0xff] (!%p269_p3), %vm374_vm2, %v1544_v0  ;;  %vm408_vm3 = vcmp.ge.s32.totalorder (!%p269_p3), %v400_v10, %v405_v11 }
   0xc   : > { %381 = vst.msk [vmem:[#allocation3 + $0x10] sm:$0xff] (!%p269_p3), %vm374_vm2, %v1544_v0  ;;  %382 = vst.msk [vmem:[#allocation3 + $0x18] sm:$0xff] (!%p269_p3), %vm374_vm2, %v1544_v0  ;;  %v1661_v13 = vsel (!%p269_p3), %vm408_vm3, 0.0, %v1550_v12 }
   0xe   : > { %s1772_s18 = smov (!%p328_p4, %s1534_s18), 1 }
   0xf   : > { %s1617_s22 = sshll.u32 %s1772_s18, 3  ;;  %s1554_s18 = smov 96  }
  0x10   : > { %s341_s25 = scalar_lea.vmem %s1762_s1, %s1617_s22  ;;  %s362_s28 = scalar_lea.vmem %s1765_s4, %s1617_s22  ;;  %v1667_v23 = vld [vmem:[#allocation2] sm:$0xff]  ;;  %v678_v54 = vld [vmem:[#allocation2 + $0x8] sm:$0xff] }
  0x11   : > { %v394_v1 = vld [vmem:[%s362_s28] sm:$0xff]  ;;  %s334_s6 = scalar_lea.vmem %s1761_s0, %s1617_s22  ;;  %s355_s9 = scalar_lea.vmem %s1764_s3, %s1617_s22  ;;  %v876_v57 = vld [vmem:[#allocation2 + $0x10] sm:$0xff]  ;;  %v1068_v61 = vld [vmem:[#allocation2 + $0x18] sm:$0xff] }
  0x12   : > { %v396_v2 = vld [vmem:[%s341_s25] sm:$0xff]  ;;  %787 = vrot.lane.b32.xlu1 %v394_v1, %s1546_s10  ;;  %s348_s17 = scalar_lea.vmem %s1763_s2, %s1617_s22  ;;  %s369_s25 = scalar_lea.vmem %s1766_s5, %s1617_s22 }
  0x13   : > { %v1635_v3 = vmul.f32 %v396_v2, %v394_v1  ;;  %v392_v4 = vld [vmem:[%s355_s9] sm:$0xff] }
  0x14   : > { %v1637_v5 = vld [vmem:[%s334_s6] sm:$0xff]  ;;  %v393_v6 = vmul.f32 0.25, %v392_v4 }
  0x15   : > { %1420 = vmatpush3.xpose.msk.msra.mxu0 %vm383_vm0, %v1635_v3  ;;  %v1683_v30 = vld [vmem:[%s348_s17] sm:$0xff] }
  0x16   : > { %v411_v7 = vmul.f32 %v1637_v5, %v393_v6  ;;  %1434 = vmatprep.subr.mxu0 %v1544_v0  ;;  %791 = vrot.lane.b32.xlu1 %v393_v6, %s1547_s11 }
  0x17   : > { %1425 = vmatpush3.msra.mxu1 %v1683_v30 }
  0x18   : > { %1422 = vmatmul.mubr.msk.f32.vlgmr.msra.gmra.mrb[0].mxu0 %vm383_vm0, %v411_v7  ;;  %1429 = vmatprep.subr.mxu1 %v1544_v0 }
  0x19   : > { %1436 = vmatprep.mubr.msk.f32.mxu0 %vm1545_vm1, %v1544_v0  ;;  %1435 = vmatpush3.msra.mxu0 %v1683_v30 }
  0x1a   : > { %988 = vrot.lane.b32.xlu1 %v393_v6, %s1549_s12  ;;  %1444 = vmatprep.subr.mxu0 %v1544_v0 }
  0x84   : > { %v788_v19 = vpop.permute.xlu1 %787 }
  0x85   : > { %v790_v29 = vmul.f32 %v788_v19, %v396_v2 }
  0x88   : > { %v792_v20 = vpop.permute.xlu1 %791 }
  0x89   : > { %v794_v31 = vmul.f32 %v792_v20, %v1637_v5 }
  0x8c   : > { %v989_v21 = vpop.permute.xlu1 %988 }
  0x8d   : > { %v991_v22 = vmul.f32 %v989_v21, %v1637_v5 }
  0xeb   : > { %v485_v14 = vpop.f32.mrb[0].mxu0 }
  0xec   : > { %v486_v15 = vadd.f32 %v485_v14, %v1661_v13  ;;  %v1423_v16 = vpop.f32.mrb[1].mxu0 }
  0xee   : > { %v491_v17 = vsel %vm490_vm4, %v486_v15, -inf }
  0xef   : > { %492 = vmax.xlane.f32.xlu0 %v491_v17 }
 0x105   : > { %598 = vrot.lane.b32.xlu0 %v393_v6, %s1546_s10 }
 0x109   : > { %993 = vrot.lane.b32.xlu0 %v991_v22, %s1552_s13 }
 0x17c   : > { %v493_v24 = vpop.xlane.xlu0 %492 }
 0x17d   : > { %v1670_v25 = vmax.f32 %v1667_v23, %v493_v24 }
 0x17f   : > { %v495_v26 = vsub.f32 %v1667_v23, %v1670_v25  ;;  %596 = vst.msk [vmem:[#allocation2] sm:$0xff] %vm374_vm2, %v1670_v25  ;;  %500 = vperm.xlu1 %1494, %v1670_v25   ;;  %v506_v25 = vld [vmem:[#allocation3] sm:$0xff] }
 0x180   : > { %v599_v27 = vpop.permute.xlu0 %598 }
 0x181   : > { %v601_v28 = vmul.f32 %v599_v27, %v1637_v5  ;;  %v496_v19 = vmul.f32 1.442695, %v495_v26 }
 0x183   : > { %603 = vrot.lane.b32.xlu1 %v601_v28, %s1553_s14 }
 0x184   : > { %v994_v39 = vpop.permute.xlu0 %993 }
 0x187   : > { %799 = vrot.lane.b32.xlu1 %v790_v29, %s1553_s14 }
 0x18b   : > { %796 = vrot.lane.b32.xlu1 %v794_v31, %s1554_s18 }
 0x1fe   : > { %v501_v32 = vpop.permute.xlu1 %500 }
 0x1ff   : > { %v503_v33 = vsub.f32 %v486_v15, %v501_v32 }
 0x201   : > { %v504_v34 = vmul.f32 1.442695, %v503_v33  ;;  %v695_v33 = vld [vmem:[#allocation3 + $0x8] sm:$0xff] }
 0x202   : > { %v604_v35 = vpop.permute.xlu1 %603 }
 0x203   : > { %1496 = vpow2.f32 %v504_v34 }
 0x206   : > { %v800_v37 = vpop.permute.xlu1 %799 }
 0x20a   : > { %v797_v38 = vpop.permute.xlu1 %796 }
 0x20d   : > { %v1497_v36 = vpop.eup %1496 }
 0x20e   : > { %1427 = vmatmul.mubr.msk.f32.vlgmr.msra.gmra.mrb[0].mxu1 %vm490_vm4, %v1497_v36 }
 0x20f   : > { %1430 = vmatpush3.xpose.msk.msra.mxu1 %vm383_vm0, %v1635_v3  ;;  %1431 = vmatprep.mubr.msk.f32.mxu1 %vm1545_vm1, %v1544_v0  ;;  %v508_v3 = vsel %vm490_vm4, %v1497_v36, 0.0  ;;  %v893_v36 = vld [vmem:[#allocation3 + $0x10] sm:$0xff] }
 0x210   : > { %1439 = vmatprep.subr.mxu1 %v1544_v0 }
 0x212   : > { %1432 = vmatmul.mubr.msk.f32.vlgmr.msra.gmra.mrb[2].mxu1 %vm383_vm0, %v604_v35 }
 0x213   : > { %1440 = vmatpush3.xpose.msk.msra.mxu1 %vm383_vm0, %v800_v37  ;;  %1441 = vmatprep.mubr.msk.f32.mxu1 %vm1545_vm1, %v1544_v0 }
 0x214   : > { %1449 = vmatprep.subr.mxu1 %v1544_v0 }
 0x216   : > { %1442 = vmatmul.mubr.msk.f32.vlgmr.msra.gmra.mrb[4].mxu1 %vm383_vm0, %v797_v38 }
 0x217   : > { %1450 = vmatpush3.xpose.msk.msra.mxu1 %vm383_vm0, %v800_v37  ;;  %1451 = vmatprep.mubr.msk.f32.mxu1 %vm1545_vm1, %v1544_v0 }
 0x21a   : > { %1452 = vmatmul.mubr.msk.f32.vlgmr.msra.gmra.mrb[6].mxu1 %vm383_vm0, %v994_v39 }
 0x2e1   : > { %v1707_v40 = vpop.f32.mrb[0].mxu1 }
 0x2e2   : > { %v1428_v41 = vpop.f32.mrb[1].mxu1 }
 0x2e3   : > { %v1085_v41 = vld [vmem:[#allocation3 + $0x18] sm:$0xff] }
 0x2e5   : > { %v673_v42 = vpop.f32.mrb[2].mxu1 }
 0x2e6   : > { %v674_v43 = vadd.f32 %v673_v42, %v1661_v13  ;;  %v1433_v44 = vpop.f32.mrb[3].mxu1 }
 0x2e8   : > { %v679_v45 = vsel %vm490_vm4, %v674_v43, -inf }
 0x2e9   : > { %680 = vmax.xlane.f32.xlu1 %v679_v45  ;;  %v871_v46 = vpop.f32.mrb[4].mxu1 }
 0x2ea   : > { %v872_v47 = vadd.f32 %v871_v46, %v1661_v13  ;;  %v1443_v48 = vpop.f32.mrb[5].mxu1 }
 0x2ec   : > { %v877_v49 = vsel %vm490_vm4, %v872_v47, -inf }
 0x2ed   : > { %878 = vmax.xlane.f32.xlu0 %v877_v49  ;;  %v1063_v50 = vpop.f32.mrb[6].mxu1 }
 0x2ee   : > { %v1064_v51 = vadd.f32 %v1063_v50, %v1661_v13  ;;  %v1453_v52 = vpop.f32.mrb[7].mxu1 }
 0x2f0   : > { %v1069_v53 = vsel %vm490_vm4, %v1064_v51, -inf }
 0x2f1   : > { %1070 = vmax.xlane.f32.xlu0 %v1069_v53 }
 0x376   : > { %v681_v55 = vpop.xlane.xlu1 %680 }
 0x377   : > { %v682_v56 = vmax.f32 %v678_v54, %v681_v55 }
 0x379   : > { %v683_v58 = vsub.f32 %v678_v54, %v682_v56  ;;  %785 = vst.msk [vmem:[#allocation2 + $0x8] sm:$0xff] %vm374_vm2, %v682_v56  ;;  %688 = vperm.xlu1 %1494, %v682_v56   ;;  %v703_v56 = vld [vmem:[#allocation4 + $0x8] sm:$0xff] }
 0x37a   : > { %v879_v59 = vpop.xlane.xlu0 %878 }
 0x37b   : > { %v880_v60 = vmax.f32 %v876_v57, %v879_v59  ;;  %v684_v21 = vmul.f32 1.442695, %v683_v58  ;;  %v901_v59 = vld [vmem:[#allocation4 + $0x10] sm:$0xff] }
 0x37d   : > { %v881_v62 = vsub.f32 %v876_v57, %v880_v60  ;;  %987 = vst.msk [vmem:[#allocation2 + $0x10] sm:$0xff] %vm374_vm2, %v880_v60  ;;  %886 = vperm.xlu0 %1495, %v880_v60  }
 0x37e   : > { %v1071_v63 = vpop.xlane.xlu0 %1070 }
 0x37f   : > { %v1072_v1 = vmax.f32 %v1068_v61, %v1071_v63  ;;  %v882_v22 = vmul.f32 1.442695, %v881_v62 }
 0x381   : > { %v1073_v2 = vsub.f32 %v1068_v61, %v1072_v1  ;;  %1175 = vst.msk [vmem:[#allocation2 + $0x18] sm:$0xff] %vm374_vm2, %v1072_v1  ;;  %1078 = vperm.xlu1 %1494, %v1072_v1   ;;  %v1093_v1 = vld [vmem:[#allocation4 + $0x18] sm:$0xff] }
 0x383   : > { %v1074_v24 = vmul.f32 1.442695, %v1073_v2 }
 0x385   : > { %909 = vrot.lane.b32.xlu1 %v1683_v30, %s1553_s14 }
 0x3a9   : > { %509 = vadd.xlane.f32.xlu1 %v508_v3 }
 0x3f8   : > { %v689_v4 = vpop.permute.xlu1 %688 }
 0x3f9   : > { %v691_v5 = vsub.f32 %v674_v43, %v689_v4  ;;  %v514_v43 = vld [vmem:[#allocation4] sm:$0xff] }
 0x3fb   : > { %v692_v6 = vmul.f32 1.442695, %v691_v5 }
 0x3fc   : > { %v887_v7 = vpop.permute.xlu0 %886 }
 0x3fd   : > { %1498 = vpow2.f32 %v692_v6  ;;  %v889_v8 = vsub.f32 %v872_v47, %v887_v7 }
 0x3ff   : > { %v890_v9 = vmul.f32 1.442695, %v889_v8 }
 0x400   : > { %v1079_v10 = vpop.permute.xlu1 %1078 }
 0x401   : > { %1500 = vpow2.f32 %v890_v9  ;;  %v1081_v11 = vsub.f32 %v1064_v51, %v1079_v10 }
 0x403   : > { %v1082_v12 = vmul.f32 1.442695, %v1081_v11 }
 0x404   : > { %v910_v13 = vpop.permute.xlu1 %909 }
 0x405   : > { %1502 = vpow2.f32 %v1082_v12 }
 0x406   : > { %1504 = vpow2.f32 %v496_v19 }
 0x407   : > { %v1499_v14 = vpop.eup %1498  ;;  %1506 = vpow2.f32 %v684_v21 }
 0x408   : > { %1437 = vmatmul.mubr.msk.f32.vlgmr.msra.gmra.mrb[2].mxu0 %vm490_vm4, %v1499_v14  ;;  %v697_v15 = vsel %vm490_vm4, %v1499_v14, 0.0  ;;  %1508 = vpow2.f32 %v882_v22 }
 0x409   : > { %698 = vadd.xlane.f32.xlu0 %v697_v15  ;;  %1445 = vmatpush3.msra.mxu0 %v910_v13  ;;  %1510 = vpow2.f32 %v1074_v24 }
 0x40a   : > { %1446 = vmatprep.mubr.msk.f32.mxu0 %vm1545_vm1, %v1544_v0  ;;  %1454 = vmatprep.subr.mxu0 %v1544_v0 }
 0x40b   : > { %v1501_v16 = vpop.eup %1500 }
 0x40c   : > { %1447 = vmatmul.mubr.msk.f32.vlgmr.msra.gmra.mrb[4].mxu0 %vm490_vm4, %v1501_v16  ;;  %v895_v17 = vsel %vm490_vm4, %v1501_v16, 0.0 }
 0x40d   : > { %896 = vadd.xlane.f32.xlu1 %v895_v17  ;;  %1455 = vmatpush3.msra.mxu0 %v910_v13 }
 0x40e   : > { %1456 = vmatprep.mubr.msk.f32.mxu0 %vm1545_vm1, %v1544_v0 }
 0x40f   : > { %v1503_v18 = vpop.eup %1502 }
 0x410   : > { %1457 = vmatmul.mubr.msk.f32.vlgmr.msra.gmra.mrb[6].mxu0 %vm490_vm4, %v1503_v18  ;;  %v1087_v20 = vsel %vm490_vm4, %v1503_v18, 0.0  ;;  %v1505_v27 = vpop.eup %1504 }
 0x411   : > { %1088 = vadd.xlane.f32.xlu1 %v1087_v20  ;;  %v1507_v0 = vpop.eup %1506  ;;  %v507_v26 = vmul.f32 %v1505_v27, %v506_v25 }
 0x412   : > { %v1509_v28 = vpop.eup %1508  ;;  %v696_v34 = vmul.f32 %v1507_v0, %v695_v33 }
 0x413   : > { %v1511_v23 = vpop.eup %1510  ;;  %v894_v38 = vmul.f32 %v1509_v28, %v893_v36 }
 0x414   : > { %v1086_v44 = vmul.f32 %v1511_v23, %v1085_v41 }
 0x41f   : > { %517 = vperm.xlu0 %1495, %v1505_v27  }
 0x422   : > { %706 = vperm.xlu1 %1494, %v1507_v0  }
 0x423   : > { %904 = vperm.xlu0 %1495, %v1509_v28  }
 0x426   : > { %1096 = vperm.xlu1 %1494, %v1511_v23  }
 0x436   : > { %v510_v29 = vpop.xlane.xlu1 %509 }
 0x437   : > { %v511_v30 = vadd.f32 %v510_v29, %v507_v26 }
 0x439   : > { %513 = vst.msk [vmem:[#allocation3] sm:$0xff] %vm374_vm2, %v511_v30 }
 0x440   : > { %v1180_v31 = vld [vmem:[#allocation3] sm:$0xff] }
 0x441   : > { %1512 = vrcp.f32 %v1180_v31 }
 0x44b   : > { %v1513_v32 = vpop.eup %1512 }
 0x44c   : > { %1184 = vperm.xlu1 %1494, %v1513_v32  }
 0x496   : > { %v699_v35 = vpop.xlane.xlu0 %698 }
 0x497   : > { %v700_v37 = vadd.f32 %v699_v35, %v696_v34 }
 0x499   : > { %701 = vst.msk [vmem:[#allocation3 + $0x8] sm:$0xff] %vm374_vm2, %v700_v37 }
 0x49a   : > { %v897_v39 = vpop.xlane.xlu1 %896 }
 0x49b   : > { %v898_v42 = vadd.f32 %v897_v39, %v894_v38 }
 0x49d   : > { %899 = vst.msk [vmem:[#allocation3 + $0x10] sm:$0xff] %vm374_vm2, %v898_v42 }
 0x49e   : > { %v1089_v45 = vpop.xlane.xlu1 %1088  ;;  %v518_v46 = vpop.permute.xlu0 %517 }
 0x49f   : > { %v1090_v47 = vadd.f32 %v1089_v45, %v1086_v44  ;;  %v520_v48 = vmul.f32 %v518_v46, %v514_v43 }
 0x4a0   : > { %v1191_v49 = vld [vmem:[#allocation3 + $0x8] sm:$0xff] }
 0x4a1   : > { %1091 = vst.msk [vmem:[#allocation3 + $0x18] sm:$0xff] %vm374_vm2, %v1090_v47  ;;  %v594_v50 = vadd.f32 %v1707_v40, %v520_v48  ;;  %1514 = vrcp.f32 %v1191_v49 }
 0x4a2   : > { %v707_v57 = vpop.permute.xlu1 %706  ;;  %v905_v60 = vpop.permute.xlu0 %904 }
 0x4a3   : > { %595 = vst.msk [vmem:[#allocation4] sm:$0xff] %vm383_vm0, %v594_v50  ;;  %v709_v58 = vmul.f32 %v707_v57, %v703_v56  ;;  %v907_v63 = vmul.f32 %v905_v60, %v901_v59 }
 0x4a4   : > { %v1202_v51 = vld [vmem:[#allocation3 + $0x10] sm:$0xff] }
 0x4a5   : > { %1516 = vrcp.f32 %v1202_v51 }
 0x4a6   : > { %v1097_v2 = vpop.permute.xlu1 %1096 }
 0x4a7   : > { %v1099_v6 = vmul.f32 %v1097_v2, %v1093_v1 }
 0x4a8   : > { %v1213_v52 = vld [vmem:[#allocation3 + $0x18] sm:$0xff] }
 0x4a9   : > { %1518 = vrcp.f32 %v1213_v52 }
 0x4aa   : > { %v1179_v20 = vld [vmem:[#allocation4] sm:$0xff] }
 0x4ab   : > { %v1515_v53 = vpop.eup %1514 }
 0x4ac   : > { %1195 = vperm.xlu1 %1494, %v1515_v53  }
 0x4af   : > { %v1517_v54 = vpop.eup %1516 }
 0x4b0   : > { %1206 = vperm.xlu1 %1494, %v1517_v54  }
 0x4b3   : > { %v1519_v55 = vpop.eup %1518 }
 0x4b4   : > { %1217 = vperm.xlu0 %1495, %v1519_v55  }
 0x4cb   : > { %v1185_v10 = vpop.permute.xlu1 %1184 }
 0x4cc   : > { %v1187_v22 = vmul.f32 %v1185_v10, %v1179_v20 }
 0x4db   : > { %v779_v61 = vpop.f32.mrb[2].mxu0 }
 0x4dc   : > { %v783_v40 = vadd.f32 %v779_v61, %v709_v58  ;;  %v1438_v62 = vpop.f32.mrb[3].mxu0 }
 0x4de   : > { %784 = vst.msk [vmem:[#allocation4 + $0x8] sm:$0xff] %vm383_vm0, %v783_v40 }
 0x4df   : > { %v981_v3 = vpop.f32.mrb[4].mxu0 }
 0x4e0   : > { %v985_v4 = vadd.f32 %v981_v3, %v907_v63  ;;  %v1448_v5 = vpop.f32.mrb[5].mxu0 }
 0x4e2   : > { %986 = vst.msk [vmem:[#allocation4 + $0x10] sm:$0xff] %vm383_vm0, %v985_v4 }
 0x4e3   : > { %v1169_v7 = vpop.f32.mrb[6].mxu0 }
 0x4e4   : > { %v1173_v8 = vadd.f32 %v1169_v7, %v1099_v6  ;;  %v1458_v9 = vpop.f32.mrb[7].mxu0 }
 0x4e5   : > { %v1189_v12 = vld [vmem:[#allocation4 + $0x8] sm:$0xff] }
 0x4e6   : > { %1174 = vst.msk [vmem:[#allocation4 + $0x18] sm:$0xff] %vm383_vm0, %v1173_v8 }
 0x4e9   : > { %v1200_v15 = vld [vmem:[#allocation4 + $0x10] sm:$0xff] }
 0x4ed   : > { %v1211_v18 = vld [vmem:[#allocation4 + $0x18] sm:$0xff] }
 0x52b   : > { %v1196_v11 = vpop.permute.xlu1 %1195 }
 0x52c   : > { %v1198_v13 = vmul.f32 %v1196_v11, %v1189_v12 }
 0x52e   : > { %1222 = vrot.lane.b32.xlu1 %v1198_v13, %s1546_s10 }
 0x52f   : > { %v1207_v14 = vpop.permute.xlu1 %1206 }
 0x530   : > { %v1209_v16 = vmul.f32 %v1207_v14, %v1200_v15 }
 0x532   : > { %1226 = vrot.lane.b32.xlu0 %v1209_v16, %s1547_s11 }
 0x533   : > { %v1218_v17 = vpop.permute.xlu0 %1217 }
 0x534   : > { %v1220_v19 = vmul.f32 %v1218_v17, %v1211_v18 }
 0x536   : > { %1230 = vrot.lane.b32.xlu1 %v1220_v19, %s1549_s12 }
 0x5a0   : > { %v1223_v21 = vpop.permute.xlu1 %1222 }
 0x5a1   : > { %v1234_v27 = vsel %vm383_vm0, %v1187_v22, %v1223_v21 }
 0x5a4   : > { %v1227_v24 = vpop.permute.xlu0 %1226 }
 0x5a5   : > { %v1236_v0 = vsel %vm1235_vm5, %v1234_v27, %v1227_v24 }
 0x5a8   : > { %v1231_v28 = vpop.permute.xlu1 %1230 }
 0x5a9   : > { %v1238_v23 = vsel %vm1237_vm6, %v1236_v0, %v1231_v28 }
 0x5aa   : > { %1240 = vst.msk [vmem:[%s369_s25] sm:$0xff] %vm1239_vm7, %v1238_v23 }
 0x5ab PF: > { %s15_s20 = sadd.s32 1, %s1542_s20   ;;  %s1767_s18 = smov %s1538_s19 }
 0x5ac   : > { %p12_p5 = scmp.ge.s32.totalorder %s15_s20, 4   ;;  %s1768_s19 = smov %s1770_s21 }
 0x5ae   :  { %14 = sbr.rel (!%p12_p5) target bundleno = 2 (0x2), region = 109 }

// kernel: gemma_model_forward.29
= control target key start
LH: loop header
LB: loop body
LE: loop exit
PB: predicated region body
PF: predicated region fallthrough
CT: control target
= control target key end

     0   :  { %vm16_vm0 = vcmask 261120   ;;  %s134_s0 = inlined_call_operand.vmem [shape: f32[16,32], index: 0, kind: input, shape index: {}]   ;;  %s135_s1 = inlined_call_operand.vmem [shape: f32[1,32], index: 1, kind: input, shape index: {}]   ;;  %s136_s2 = inlined_call_operand.hbm [shape: f32[16,32], index: 2, kind: output, shape index: {}]  }
   0x1   :  { %v12_v0 = vld [vmem:[%s134_s0] sm:$0xff]  ;;  %v13_v1 = vld [vmem:[%s134_s0 + $0x8] sm:$0xff] }
   0x2   :  { %7 = vsyncpa [#allocation3], 0  ;;  %v14_v2 = vmul.f32 %v12_v0, %v12_v0  ;;  %v15_v3 = vmul.f32 %v13_v1, %v13_v1  ;;  %v35_v8 = vlaneseq  ;;  %v32_v14 = vld [vmem:[%s135_s1] sm:$0x1]  ;;  %s91_s14 = smov [#allocation2]  }
   0x3   :  { %v33_v15 = vadd.f32 1.0, %v32_v14  ;;  %s49_s15 = sshll.u32 %s91_s14, 4  ;;  %s50_s15 = int_to_ptr.vmem [resolvable:$true] %s49_s15 }
   0x4   :  { %v17_v4 = vsel %vm16_vm0, %v14_v2, 0.0  ;;  %v20_v5 = vsel %vm16_vm0, %v15_v3, 0.0  ;;  %v36_v12 = vshrl.u32 %v35_v8, 7  ;;  %s67_s16 = scalar_lea.vmem %s50_s15, 256  ;;  %p72_p1 = scmp.lt.s32.totalorder %s50_s15, %s50_s15 }
   0x5   :  { %18 = vadd.xlane.f32.xlu0 %v17_v4  ;;  %p68_p0 = scmp.ne.s32.totalorder %s50_s15, %s67_s16  ;;  %p73_p2 = scmp.lt.s32.totalorder %s67_s16, %s67_s16 }
   0x6   :  { %v37_v16 = vsub.s32 0, %v36_v12 }
   0x7   :  { %p74_p3 = por %p73_p2, %p72_p1 }
   0x8   :  { %v38_v17 = vrot.slane %v33_v15, %v37_v16 }
   0x9   :  { %21 = vadd.xlane.f32.xlu0 %v20_v5  ;;  %p75_p4 = pnand %p74_p3, %p68_p0 }
  0x92   :  { %v19_v6 = vpop.xlane.xlu0 %18 }
  0x93   :  { %v24_v7 = vmul.f32 0.03125, %v19_v6 }
  0x95   :  { %v26_v9 = vadd.f32 1e-06, %v24_v7 }
  0x96   :  { %v22_v10 = vpop.xlane.xlu0 %21 }
  0x97   :  { %63 = vrsqrt.f32 %v26_v9  ;;  %v25_v11 = vmul.f32 0.03125, %v22_v10 }
  0x99   :  { %v27_v13 = vadd.f32 1e-06, %v25_v11 }
  0x9b   :  { %65 = vrsqrt.f32 %v27_v13 }
  0xa1   :  { %v64_v18 = vpop.eup %63 }
  0xa2   :  { %v30_v19 = vmul.f32 %v64_v18, %v12_v0 }
  0xa4   :  { %v40_v20 = vmul.f32 %v38_v17, %v30_v19 }
  0xa5   :  { %v66_v21 = vpop.eup %65 }
  0xa6   :  { %v31_v22 = vmul.f32 %v66_v21, %v13_v1  ;;  %42 = vst.msk [vmem:[#allocation2] sm:$0xff] %vm16_vm0, %v40_v20 }
  0xa8   :  { %v41_v23 = vmul.f32 %v38_v17, %v31_v22 }
  0xaa   :  { %43 = vst.msk [vmem:[#allocation2 + $0x8] sm:$0xff] %vm16_vm0, %v41_v23 }
  0xab   :  { %78 = shalt.err (!%p75_p4)
}
  0xac   :  { %s79_s18 = scalar_lea.hbm %s136_s2, 256 }
  0xad   :  { %p80_p5 = scmp.ne.s32.totalorder %s136_s2, %s79_s18  ;;  %p83_p6 = scmp.lt.u32.totalorder %s79_s18, %s136_s2 }
  0xaf   :  { %p85_p7 = pnand %p83_p6, %p80_p5 }
  0xb1   :  { %88 = shalt.err (!%p85_p7)
}
  0xb2   :  { %s92_s23 = smov 128   ;;  %s93_s24 = smov 8  }
  0xb3   :  { %55 = dma.vmem_to_hbm [thread:$0]  %s50_s15, 256, %s136_s2, [#allocation3], %s92_s23, %s92_s23, %s93_s24  }
  0xb4   :  { %89 = dma.done.wait [#allocation3], 256  }
  0xb5   :  { %90 = vsyncadd [#allocation3], 4294967040 }
  0xb6   :  { %59 = vsyncpa [#allocation3], 1 }

</bundles_post_ra>
